<compile_context>
chip_gen: v6e
topology: v6e:2x2x1
jax: 0.10.0
libtpu: 0.0.40
codegen_flags: <defaults>
</compile_context>

<pallas_src>
import jax
import jax.numpy as jnp
from jax import lax
from jax.experimental import pallas as pl
from jax.experimental.pallas import tpu as pltpu


def spp_kernel(x_ref, o_ref):
    # x_ref block: (1, C_TILE, H, W); o_ref block: (1, 4, C_TILE, H, W)
    _, c_tile, H, W = x_ref.shape
    neg = jnp.array(-jnp.inf, dtype=x_ref.dtype)

    # Hoisted -inf-padding validity masks: one per (axis, shift), reused across
    # every channel and every cascade stage in this grid step.
    idx_h = lax.broadcasted_iota(jnp.int32, (H, W), 0)
    idx_w = lax.broadcasted_iota(jnp.int32, (H, W), 1)
    shifts = (-2, -1, 1, 2)
    mask_h = {s: (idx_h + s >= 0) & (idx_h + s < H) for s in shifts}
    mask_w = {s: (idx_w + s >= 0) & (idx_w + s < W) for s in shifts}

    def slide_max5(a, axis, masks, n):
        # 5-wide sliding max, stride 1, pad 2 with -inf, along `axis` of (H, W).
        out = a
        for s in shifts:
            rolled = pltpu.roll(a, shift=(-s) % n, axis=axis)  # rolled[i] = a[i+s]
            out = jnp.maximum(out, jnp.where(masks[s], rolled, neg))
        return out

    def pool5(a):
        # 5x5 max pool, stride 1, padding 2 (separable: rows then cols).
        return slide_max5(slide_max5(a, 0, mask_h, H), 1, mask_w, W)

    def one_channel(ci):
        x = x_ref[0, ci]              # (H, W)
        p5 = pool5(x)                 # == max_pool2d(x, 5, pad=2)
        p9 = pool5(p5)                # == max_pool2d(x, 9, pad=4)   (cascade)
        p13 = pool5(p9)               # == max_pool2d(x, 13, pad=6)  (cascade)
        o_ref[0, 0, ci] = x
        o_ref[0, 1, ci] = p5
        o_ref[0, 2, ci] = p9
        o_ref[0, 3, ci] = p13

    if c_tile <= 16:
        # Small tile: fully unroll for LLO scheduler visibility.
        for ci in range(c_tile):
            one_channel(ci)
    else:
        def body(ci, carry):
            one_channel(ci)
            return carry
        lax.fori_loop(0, c_tile, body, 0)


def _pick_c_tile(C, H, W, itemsize):
    """Largest divisor of C whose double-buffered (1 in + 4 out) blocks fit a
    conservative VMEM budget (safe even for v7x's smaller VMEM)."""
    budget = 8 * 1024 * 1024
    per_chan = 2 * 5 * H * W * itemsize   # 2 pipeline buffers x (1 in + 4 out)
    max_tile = max(1, min(256, budget // per_chan))
    t = int(min(C, max_tile))
    while C % t:
        t -= 1
    return t


def spp(x, c_tile=None):
    """SPP forward. x: (N, C, H, W) float -> (N, 4*C, H, W)."""
    N, C, H, W = x.shape
    if c_tile is None:
        c_tile = _pick_c_tile(C, H, W, x.dtype.itemsize)

    out = pl.pallas_call(
        spp_kernel,
        out_shape=jax.ShapeDtypeStruct((N, 4, C, H, W), x.dtype),
        grid=(N, C // c_tile),
        in_specs=[pl.BlockSpec((1, c_tile, H, W), lambda n, c: (n, c, 0, 0))],
        out_specs=pl.BlockSpec((1, 4, c_tile, H, W), lambda n, c: (n, 0, c, 0, 0)),
        compiler_params=pltpu.CompilerParams(
            dimension_semantics=("parallel", "parallel"),
            vmem_limit_bytes=32 * 1024 * 1024),
    )(x)
    # (N, 4, C, H, W) -> (N, 4*C, H, W): contiguous reshape, matches
    # torch.cat([x, x1, x2, x3], dim=1) channel ordering exactly.
    return out.reshape(N, 4 * C, H, W)


def _reference_spp(x):
    """Pure-JAX reference (lax.reduce_window) for correctness checking."""
    def pool(a, k):
        p = k // 2
        return lax.reduce_window(
            a, -jnp.inf, lax.max,
            window_dimensions=(1, 1, k, k),
            window_strides=(1, 1, 1, 1),
            padding=((0, 0), (0, 0), (p, p), (p, p)))
    return jnp.concatenate([x, pool(x, 5), pool(x, 9), pool(x, 13)], axis=1)


if __name__ == "__main__":
    key = jax.random.PRNGKey(0)
    x = jax.random.normal(key, (2, 4, 16, 16), dtype=jnp.float32)

    y = jax.block_until_ready(spp(x))

    y_ref = _reference_spp(x)
    assert y.shape == (2, 16, 16, 16), y.shape
    assert jnp.allclose(y, y_ref), "mismatch vs reference"

    print("KERNEL_OK")
</pallas_src>

<mosaic_0001>
module attributes {stable_mosaic.version = 11 : i64} {
  func.func @spp_kernel(%arg0: i32, %arg1: i32, %arg2: memref<1x4x16x16xf32, #tpu.memory_space<vmem>>, %arg3: memref<1x4x4x16x16xf32, #tpu.memory_space<vmem>>) attributes {dimension_semantics = [#tpu.dimension_semantics<parallel>, #tpu.dimension_semantics<parallel>], iteration_bounds = array<i64: 2, 1>, scalar_prefetch = 0 : i64, scratch_operands = 0 : i64, tpu.core_type = #tpu.core_type<tc>, window_params = [{transform_indices = @transform_0, window_bounds = array<i64: 1, 4, 16, 16>}, {transform_indices = @transform_1, window_bounds = array<i64: 1, 4, 4, 16, 16>}]} {
    %0 = tpu.iota {dimensions = array<i32: 0>} : vector<16x16xi32>
    %1 = tpu.iota {dimensions = array<i32: 1>} : vector<16x16xi32>
    %c-2_i32 = arith.constant -2 : i32
    %2 = vector.broadcast %c-2_i32 : i32 to vector<16x16xi32>
    %3 = arith.addi %0, %2 : vector<16x16xi32>
    %c0_i32 = arith.constant 0 : i32
    %4 = vector.broadcast %c0_i32 : i32 to vector<16x16xi32>
    %5 = arith.cmpi sge, %3, %4 : vector<16x16xi32>
    %c-2_i32_0 = arith.constant -2 : i32
    %6 = vector.broadcast %c-2_i32_0 : i32 to vector<16x16xi32>
    %7 = arith.addi %0, %6 : vector<16x16xi32>
    %c16_i32 = arith.constant 16 : i32
    %8 = vector.broadcast %c16_i32 : i32 to vector<16x16xi32>
    %9 = arith.cmpi slt, %7, %8 : vector<16x16xi32>
    %10 = arith.andi %5, %9 : vector<16x16xi1>
    %c-1_i32 = arith.constant -1 : i32
    %11 = vector.broadcast %c-1_i32 : i32 to vector<16x16xi32>
    %12 = arith.addi %0, %11 : vector<16x16xi32>
    %c0_i32_1 = arith.constant 0 : i32
    %13 = vector.broadcast %c0_i32_1 : i32 to vector<16x16xi32>
    %14 = arith.cmpi sge, %12, %13 : vector<16x16xi32>
    %c-1_i32_2 = arith.constant -1 : i32
    %15 = vector.broadcast %c-1_i32_2 : i32 to vector<16x16xi32>
    %16 = arith.addi %0, %15 : vector<16x16xi32>
    %c16_i32_3 = arith.constant 16 : i32
    %17 = vector.broadcast %c16_i32_3 : i32 to vector<16x16xi32>
    %18 = arith.cmpi slt, %16, %17 : vector<16x16xi32>
    %19 = arith.andi %14, %18 : vector<16x16xi1>
    %c1_i32 = arith.constant 1 : i32
    %20 = vector.broadcast %c1_i32 : i32 to vector<16x16xi32>
    %21 = arith.addi %0, %20 : vector<16x16xi32>
    %c0_i32_4 = arith.constant 0 : i32
    %22 = vector.broadcast %c0_i32_4 : i32 to vector<16x16xi32>
    %23 = arith.cmpi sge, %21, %22 : vector<16x16xi32>
    %c1_i32_5 = arith.constant 1 : i32
    %24 = vector.broadcast %c1_i32_5 : i32 to vector<16x16xi32>
    %25 = arith.addi %0, %24 : vector<16x16xi32>
    %c16_i32_6 = arith.constant 16 : i32
    %26 = vector.broadcast %c16_i32_6 : i32 to vector<16x16xi32>
    %27 = arith.cmpi slt, %25, %26 : vector<16x16xi32>
    %28 = arith.andi %23, %27 : vector<16x16xi1>
    %c2_i32 = arith.constant 2 : i32
    %29 = vector.broadcast %c2_i32 : i32 to vector<16x16xi32>
    %30 = arith.addi %0, %29 : vector<16x16xi32>
    %c0_i32_7 = arith.constant 0 : i32
    %31 = vector.broadcast %c0_i32_7 : i32 to vector<16x16xi32>
    %32 = arith.cmpi sge, %30, %31 : vector<16x16xi32>
    %c2_i32_8 = arith.constant 2 : i32
    %33 = vector.broadcast %c2_i32_8 : i32 to vector<16x16xi32>
    %34 = arith.addi %0, %33 : vector<16x16xi32>
    %c16_i32_9 = arith.constant 16 : i32
    %35 = vector.broadcast %c16_i32_9 : i32 to vector<16x16xi32>
    %36 = arith.cmpi slt, %34, %35 : vector<16x16xi32>
    %37 = arith.andi %32, %36 : vector<16x16xi1>
    %c-2_i32_10 = arith.constant -2 : i32
    %38 = vector.broadcast %c-2_i32_10 : i32 to vector<16x16xi32>
    %39 = arith.addi %1, %38 : vector<16x16xi32>
    %c0_i32_11 = arith.constant 0 : i32
    %40 = vector.broadcast %c0_i32_11 : i32 to vector<16x16xi32>
    %41 = arith.cmpi sge, %39, %40 : vector<16x16xi32>
    %c-2_i32_12 = arith.constant -2 : i32
    %42 = vector.broadcast %c-2_i32_12 : i32 to vector<16x16xi32>
    %43 = arith.addi %1, %42 : vector<16x16xi32>
    %c16_i32_13 = arith.constant 16 : i32
    %44 = vector.broadcast %c16_i32_13 : i32 to vector<16x16xi32>
    %45 = arith.cmpi slt, %43, %44 : vector<16x16xi32>
    %46 = arith.andi %41, %45 : vector<16x16xi1>
    %c-1_i32_14 = arith.constant -1 : i32
    %47 = vector.broadcast %c-1_i32_14 : i32 to vector<16x16xi32>
    %48 = arith.addi %1, %47 : vector<16x16xi32>
    %c0_i32_15 = arith.constant 0 : i32
    %49 = vector.broadcast %c0_i32_15 : i32 to vector<16x16xi32>
    %50 = arith.cmpi sge, %48, %49 : vector<16x16xi32>
    %c-1_i32_16 = arith.constant -1 : i32
    %51 = vector.broadcast %c-1_i32_16 : i32 to vector<16x16xi32>
    %52 = arith.addi %1, %51 : vector<16x16xi32>
    %c16_i32_17 = arith.constant 16 : i32
    %53 = vector.broadcast %c16_i32_17 : i32 to vector<16x16xi32>
    %54 = arith.cmpi slt, %52, %53 : vector<16x16xi32>
    %55 = arith.andi %50, %54 : vector<16x16xi1>
    %c1_i32_18 = arith.constant 1 : i32
    %56 = vector.broadcast %c1_i32_18 : i32 to vector<16x16xi32>
    %57 = arith.addi %1, %56 : vector<16x16xi32>
    %c0_i32_19 = arith.constant 0 : i32
    %58 = vector.broadcast %c0_i32_19 : i32 to vector<16x16xi32>
    %59 = arith.cmpi sge, %57, %58 : vector<16x16xi32>
    %c1_i32_20 = arith.constant 1 : i32
    %60 = vector.broadcast %c1_i32_20 : i32 to vector<16x16xi32>
    %61 = arith.addi %1, %60 : vector<16x16xi32>
    %c16_i32_21 = arith.constant 16 : i32
    %62 = vector.broadcast %c16_i32_21 : i32 to vector<16x16xi32>
    %63 = arith.cmpi slt, %61, %62 : vector<16x16xi32>
    %64 = arith.andi %59, %63 : vector<16x16xi1>
    %c2_i32_22 = arith.constant 2 : i32
    %65 = vector.broadcast %c2_i32_22 : i32 to vector<16x16xi32>
    %66 = arith.addi %1, %65 : vector<16x16xi32>
    %c0_i32_23 = arith.constant 0 : i32
    %67 = vector.broadcast %c0_i32_23 : i32 to vector<16x16xi32>
    %68 = arith.cmpi sge, %66, %67 : vector<16x16xi32>
    %c2_i32_24 = arith.constant 2 : i32
    %69 = vector.broadcast %c2_i32_24 : i32 to vector<16x16xi32>
    %70 = arith.addi %1, %69 : vector<16x16xi32>
    %c16_i32_25 = arith.constant 16 : i32
    %71 = vector.broadcast %c16_i32_25 : i32 to vector<16x16xi32>
    %72 = arith.cmpi slt, %70, %71 : vector<16x16xi32>
    %73 = arith.andi %68, %72 : vector<16x16xi1>
    %c0 = arith.constant 0 : index
    %c0_26 = arith.constant 0 : index
    %c0_27 = arith.constant 0 : index
    %c0_28 = arith.constant 0 : index
    %74 = vector.load %arg2[%c0, %c0_26, %c0_27, %c0_28] : memref<1x4x16x16xf32, #tpu.memory_space<vmem>>, vector<1x1x16x16xf32>
    %75 = vector.shape_cast %74 : vector<1x1x16x16xf32> to vector<16x16xf32>
    %c2_i32_29 = arith.constant 2 : i32
    %76 = tpu.dynamic_rotate %75 by %c2_i32_29 dim 0 : vector<16x16xf32>, i32 -> vector<16x16xf32>
    %cst = arith.constant 0xFF800000 : f32
    %77 = vector.broadcast %cst : f32 to vector<16x16xf32>
    %78 = arith.select %10, %76, %77 : vector<16x16xi1>, vector<16x16xf32>
    %79 = arith.maximumf %75, %78 : vector<16x16xf32>
    %c1_i32_30 = arith.constant 1 : i32
    %80 = tpu.dynamic_rotate %75 by %c1_i32_30 dim 0 : vector<16x16xf32>, i32 -> vector<16x16xf32>
    %cst_31 = arith.constant 0xFF800000 : f32
    %81 = vector.broadcast %cst_31 : f32 to vector<16x16xf32>
    %82 = arith.select %19, %80, %81 : vector<16x16xi1>, vector<16x16xf32>
    %83 = arith.maximumf %79, %82 : vector<16x16xf32>
    %c15_i32 = arith.constant 15 : i32
    %84 = tpu.dynamic_rotate %75 by %c15_i32 dim 0 : vector<16x16xf32>, i32 -> vector<16x16xf32>
    %cst_32 = arith.constant 0xFF800000 : f32
    %85 = vector.broadcast %cst_32 : f32 to vector<16x16xf32>
    %86 = arith.select %28, %84, %85 : vector<16x16xi1>, vector<16x16xf32>
    %87 = arith.maximumf %83, %86 : vector<16x16xf32>
    %c14_i32 = arith.constant 14 : i32
    %88 = tpu.dynamic_rotate %75 by %c14_i32 dim 0 : vector<16x16xf32>, i32 -> vector<16x16xf32>
    %cst_33 = arith.constant 0xFF800000 : f32
    %89 = vector.broadcast %cst_33 : f32 to vector<16x16xf32>
    %90 = arith.select %37, %88, %89 : vector<16x16xi1>, vector<16x16xf32>
    %91 = arith.maximumf %87, %90 : vector<16x16xf32>
    %c2_i32_34 = arith.constant 2 : i32
    %92 = tpu.dynamic_rotate %91 by %c2_i32_34 dim 1 : vector<16x16xf32>, i32 -> vector<16x16xf32>
    %cst_35 = arith.constant 0xFF800000 : f32
    %93 = vector.broadcast %cst_35 : f32 to vector<16x16xf32>
    %94 = arith.select %46, %92, %93 : vector<16x16xi1>, vector<16x16xf32>
    %95 = arith.maximumf %91, %94 : vector<16x16xf32>
    %c1_i32_36 = arith.constant 1 : i32
    %96 = tpu.dynamic_rotate %91 by %c1_i32_36 dim 1 : vector<16x16xf32>, i32 -> vector<16x16xf32>
    %cst_37 = arith.constant 0xFF800000 : f32
    %97 = vector.broadcast %cst_37 : f32 to vector<16x16xf32>
    %98 = arith.select %55, %96, %97 : vector<16x16xi1>, vector<16x16xf32>
    %99 = arith.maximumf %95, %98 : vector<16x16xf32>
    %c15_i32_38 = arith.constant 15 : i32
    %100 = tpu.dynamic_rotate %91 by %c15_i32_38 dim 1 : vector<16x16xf32>, i32 -> vector<16x16xf32>
    %cst_39 = arith.constant 0xFF800000 : f32
    %101 = vector.broadcast %cst_39 : f32 to vector<16x16xf32>
    %102 = arith.select %64, %100, %101 : vector<16x16xi1>, vector<16x16xf32>
    %103 = arith.maximumf %99, %102 : vector<16x16xf32>
    %c14_i32_40 = arith.constant 14 : i32
    %104 = tpu.dynamic_rotate %91 by %c14_i32_40 dim 1 : vector<16x16xf32>, i32 -> vector<16x16xf32>
    %cst_41 = arith.constant 0xFF800000 : f32
    %105 = vector.broadcast %cst_41 : f32 to vector<16x16xf32>
    %106 = arith.select %73, %104, %105 : vector<16x16xi1>, vector<16x16xf32>
    %107 = arith.maximumf %103, %106 : vector<16x16xf32>
    %c2_i32_42 = arith.constant 2 : i32
    %108 = tpu.dynamic_rotate %107 by %c2_i32_42 dim 0 : vector<16x16xf32>, i32 -> vector<16x16xf32>
    %cst_43 = arith.constant 0xFF800000 : f32
    %109 = vector.broadcast %cst_43 : f32 to vector<16x16xf32>
    %110 = arith.select %10, %108, %109 : vector<16x16xi1>, vector<16x16xf32>
    %111 = arith.maximumf %107, %110 : vector<16x16xf32>
    %c1_i32_44 = arith.constant 1 : i32
    %112 = tpu.dynamic_rotate %107 by %c1_i32_44 dim 0 : vector<16x16xf32>, i32 -> vector<16x16xf32>
    %cst_45 = arith.constant 0xFF800000 : f32
    %113 = vector.broadcast %cst_45 : f32 to vector<16x16xf32>
    %114 = arith.select %19, %112, %113 : vector<16x16xi1>, vector<16x16xf32>
    %115 = arith.maximumf %111, %114 : vector<16x16xf32>
    %c15_i32_46 = arith.constant 15 : i32
    %116 = tpu.dynamic_rotate %107 by %c15_i32_46 dim 0 : vector<16x16xf32>, i32 -> vector<16x16xf32>
    %cst_47 = arith.constant 0xFF800000 : f32
    %117 = vector.broadcast %cst_47 : f32 to vector<16x16xf32>
    %118 = arith.select %28, %116, %117 : vector<16x16xi1>, vector<16x16xf32>
    %119 = arith.maximumf %115, %118 : vector<16x16xf32>
    %c14_i32_48 = arith.constant 14 : i32
    %120 = tpu.dynamic_rotate %107 by %c14_i32_48 dim 0 : vector<16x16xf32>, i32 -> vector<16x16xf32>
    %cst_49 = arith.constant 0xFF800000 : f32
    %121 = vector.broadcast %cst_49 : f32 to vector<16x16xf32>
    %122 = arith.select %37, %120, %121 : vector<16x16xi1>, vector<16x16xf32>
    %123 = arith.maximumf %119, %122 : vector<16x16xf32>
    %c2_i32_50 = arith.constant 2 : i32
    %124 = tpu.dynamic_rotate %123 by %c2_i32_50 dim 1 : vector<16x16xf32>, i32 -> vector<16x16xf32>
    %cst_51 = arith.constant 0xFF800000 : f32
    %125 = vector.broadcast %cst_51 : f32 to vector<16x16xf32>
    %126 = arith.select %46, %124, %125 : vector<16x16xi1>, vector<16x16xf32>
    %127 = arith.maximumf %123, %126 : vector<16x16xf32>
    %c1_i32_52 = arith.constant 1 : i32
    %128 = tpu.dynamic_rotate %123 by %c1_i32_52 dim 1 : vector<16x16xf32>, i32 -> vector<16x16xf32>
    %cst_53 = arith.constant 0xFF800000 : f32
    %129 = vector.broadcast %cst_53 : f32 to vector<16x16xf32>
    %130 = arith.select %55, %128, %129 : vector<16x16xi1>, vector<16x16xf32>
    %131 = arith.maximumf %127, %130 : vector<16x16xf32>
    %c15_i32_54 = arith.constant 15 : i32
    %132 = tpu.dynamic_rotate %123 by %c15_i32_54 dim 1 : vector<16x16xf32>, i32 -> vector<16x16xf32>
    %cst_55 = arith.constant 0xFF800000 : f32
    %133 = vector.broadcast %cst_55 : f32 to vector<16x16xf32>
    %134 = arith.select %64, %132, %133 : vector<16x16xi1>, vector<16x16xf32>
    %135 = arith.maximumf %131, %134 : vector<16x16xf32>
    %c14_i32_56 = arith.constant 14 : i32
    %136 = tpu.dynamic_rotate %123 by %c14_i32_56 dim 1 : vector<16x16xf32>, i32 -> vector<16x16xf32>
    %cst_57 = arith.constant 0xFF800000 : f32
    %137 = vector.broadcast %cst_57 : f32 to vector<16x16xf32>
    %138 = arith.select %73, %136, %137 : vector<16x16xi1>, vector<16x16xf32>
    %139 = arith.maximumf %135, %138 : vector<16x16xf32>
    %c2_i32_58 = arith.constant 2 : i32
    %140 = tpu.dynamic_rotate %139 by %c2_i32_58 dim 0 : vector<16x16xf32>, i32 -> vector<16x16xf32>
    %cst_59 = arith.constant 0xFF800000 : f32
    %141 = vector.broadcast %cst_59 : f32 to vector<16x16xf32>
    %142 = arith.select %10, %140, %141 : vector<16x16xi1>, vector<16x16xf32>
    %143 = arith.maximumf %139, %142 : vector<16x16xf32>
    %c1_i32_60 = arith.constant 1 : i32
    %144 = tpu.dynamic_rotate %139 by %c1_i32_60 dim 0 : vector<16x16xf32>, i32 -> vector<16x16xf32>
    %cst_61 = arith.constant 0xFF800000 : f32
    %145 = vector.broadcast %cst_61 : f32 to vector<16x16xf32>
    %146 = arith.select %19, %144, %145 : vector<16x16xi1>, vector<16x16xf32>
    %147 = arith.maximumf %143, %146 : vector<16x16xf32>
    %c15_i32_62 = arith.constant 15 : i32
    %148 = tpu.dynamic_rotate %139 by %c15_i32_62 dim 0 : vector<16x16xf32>, i32 -> vector<16x16xf32>
    %cst_63 = arith.constant 0xFF800000 : f32
    %149 = vector.broadcast %cst_63 : f32 to vector<16x16xf32>
    %150 = arith.select %28, %148, %149 : vector<16x16xi1>, vector<16x16xf32>
    %151 = arith.maximumf %147, %150 : vector<16x16xf32>
    %c14_i32_64 = arith.constant 14 : i32
    %152 = tpu.dynamic_rotate %139 by %c14_i32_64 dim 0 : vector<16x16xf32>, i32 -> vector<16x16xf32>
    %cst_65 = arith.constant 0xFF800000 : f32
    %153 = vector.broadcast %cst_65 : f32 to vector<16x16xf32>
    %154 = arith.select %37, %152, %153 : vector<16x16xi1>, vector<16x16xf32>
    %155 = arith.maximumf %151, %154 : vector<16x16xf32>
    %c2_i32_66 = arith.constant 2 : i32
    %156 = tpu.dynamic_rotate %155 by %c2_i32_66 dim 1 : vector<16x16xf32>, i32 -> vector<16x16xf32>
    %cst_67 = arith.constant 0xFF800000 : f32
    %157 = vector.broadcast %cst_67 : f32 to vector<16x16xf32>
    %158 = arith.select %46, %156, %157 : vector<16x16xi1>, vector<16x16xf32>
    %159 = arith.maximumf %155, %158 : vector<16x16xf32>
    %c1_i32_68 = arith.constant 1 : i32
    %160 = tpu.dynamic_rotate %155 by %c1_i32_68 dim 1 : vector<16x16xf32>, i32 -> vector<16x16xf32>
    %cst_69 = arith.constant 0xFF800000 : f32
    %161 = vector.broadcast %cst_69 : f32 to vector<16x16xf32>
    %162 = arith.select %55, %160, %161 : vector<16x16xi1>, vector<16x16xf32>
    %163 = arith.maximumf %159, %162 : vector<16x16xf32>
    %c15_i32_70 = arith.constant 15 : i32
    %164 = tpu.dynamic_rotate %155 by %c15_i32_70 dim 1 : vector<16x16xf32>, i32 -> vector<16x16xf32>
    %cst_71 = arith.constant 0xFF800000 : f32
    %165 = vector.broadcast %cst_71 : f32 to vector<16x16xf32>
    %166 = arith.select %64, %164, %165 : vector<16x16xi1>, vector<16x16xf32>
    %167 = arith.maximumf %163, %166 : vector<16x16xf32>
    %c14_i32_72 = arith.constant 14 : i32
    %168 = tpu.dynamic_rotate %155 by %c14_i32_72 dim 1 : vector<16x16xf32>, i32 -> vector<16x16xf32>
    %cst_73 = arith.constant 0xFF800000 : f32
    %169 = vector.broadcast %cst_73 : f32 to vector<16x16xf32>
    %170 = arith.select %73, %168, %169 : vector<16x16xi1>, vector<16x16xf32>
    %171 = arith.maximumf %167, %170 : vector<16x16xf32>
    %c0_74 = arith.constant 0 : index
    %c0_75 = arith.constant 0 : index
    %c0_76 = arith.constant 0 : index
    %c0_77 = arith.constant 0 : index
    %c0_78 = arith.constant 0 : index
    %172 = vector.load %arg3[%c0_74, %c0_75, %c0_76, %c0_77, %c0_78] : memref<1x4x4x16x16xf32, #tpu.memory_space<vmem>>, vector<1x1x1x16x16xf32>
    %173 = vector.shape_cast %172 : vector<1x1x1x16x16xf32> to vector<16x16xf32>
    %174 = vector.shape_cast %75 : vector<16x16xf32> to vector<1x1x1x16x16xf32>
    tpu.vector_store %arg3[%c0_74, %c0_75, %c0_76, %c0_77, %c0_78], %174 {strides = array<i32>} : memref<1x4x4x16x16xf32, #tpu.memory_space<vmem>>, vector<1x1x1x16x16xf32>,
    %c0_79 = arith.constant 0 : index
    %c1 = arith.constant 1 : index
    %c0_80 = arith.constant 0 : index
    %c0_81 = arith.constant 0 : index
    %c0_82 = arith.constant 0 : index
    %175 = vector.load %arg3[%c0_79, %c1, %c0_80, %c0_81, %c0_82] : memref<1x4x4x16x16xf32, #tpu.memory_space<vmem>>, vector<1x1x1x16x16xf32>
    %176 = vector.shape_cast %175 : vector<1x1x1x16x16xf32> to vector<16x16xf32>
    %177 = vector.shape_cast %107 : vector<16x16xf32> to vector<1x1x1x16x16xf32>
    tpu.vector_store %arg3[%c0_79, %c1, %c0_80, %c0_81, %c0_82], %177 {strides = array<i32>} : memref<1x4x4x16x16xf32, #tpu.memory_space<vmem>>, vector<1x1x1x16x16xf32>,
    %c0_83 = arith.constant 0 : index
    %c2 = arith.constant 2 : index
    %c0_84 = arith.constant 0 : index
    %c0_85 = arith.constant 0 : index
    %c0_86 = arith.constant 0 : index
    %178 = vector.load %arg3[%c0_83, %c2, %c0_84, %c0_85, %c0_86] : memref<1x4x4x16x16xf32, #tpu.memory_space<vmem>>, vector<1x1x1x16x16xf32>
    %179 = vector.shape_cast %178 : vector<1x1x1x16x16xf32> to vector<16x16xf32>
    %180 = vector.shape_cast %139 : vector<16x16xf32> to vector<1x1x1x16x16xf32>
    tpu.vector_store %arg3[%c0_83, %c2, %c0_84, %c0_85, %c0_86], %180 {strides = array<i32>} : memref<1x4x4x16x16xf32, #tpu.memory_space<vmem>>, vector<1x1x1x16x16xf32>,
    %c0_87 = arith.constant 0 : index
    %c3 = arith.constant 3 : index
    %c0_88 = arith.constant 0 : index
    %c0_89 = arith.constant 0 : index
    %c0_90 = arith.constant 0 : index
    %181 = vector.load %arg3[%c0_87, %c3, %c0_88, %c0_89, %c0_90] : memref<1x4x4x16x16xf32, #tpu.memory_space<vmem>>, vector<1x1x1x16x16xf32>
    %182 = vector.shape_cast %181 : vector<1x1x1x16x16xf32> to vector<16x16xf32>
    %183 = vector.shape_cast %171 : vector<16x16xf32> to vector<1x1x1x16x16xf32>
    tpu.vector_store %arg3[%c0_87, %c3, %c0_88, %c0_89, %c0_90], %183 {strides = array<i32>} : memref<1x4x4x16x16xf32, #tpu.memory_space<vmem>>, vector<1x1x1x16x16xf32>,
    %c0_91 = arith.constant 0 : index
    %c1_92 = arith.constant 1 : index
    %c0_93 = arith.constant 0 : index
    %c0_94 = arith.constant 0 : index
    %184 = vector.load %arg2[%c0_91, %c1_92, %c0_93, %c0_94] : memref<1x4x16x16xf32, #tpu.memory_space<vmem>>, vector<1x1x16x16xf32>
    %185 = vector.shape_cast %184 : vector<1x1x16x16xf32> to vector<16x16xf32>
    %c2_i32_95 = arith.constant 2 : i32
    %186 = tpu.dynamic_rotate %185 by %c2_i32_95 dim 0 : vector<16x16xf32>, i32 -> vector<16x16xf32>
    %cst_96 = arith.constant 0xFF800000 : f32
    %187 = vector.broadcast %cst_96 : f32 to vector<16x16xf32>
    %188 = arith.select %10, %186, %187 : vector<16x16xi1>, vector<16x16xf32>
    %189 = arith.maximumf %185, %188 : vector<16x16xf32>
    %c1_i32_97 = arith.constant 1 : i32
    %190 = tpu.dynamic_rotate %185 by %c1_i32_97 dim 0 : vector<16x16xf32>, i32 -> vector<16x16xf32>
    %cst_98 = arith.constant 0xFF800000 : f32
    %191 = vector.broadcast %cst_98 : f32 to vector<16x16xf32>
    %192 = arith.select %19, %190, %191 : vector<16x16xi1>, vector<16x16xf32>
    %193 = arith.maximumf %189, %192 : vector<16x16xf32>
    %c15_i32_99 = arith.constant 15 : i32
    %194 = tpu.dynamic_rotate %185 by %c15_i32_99 dim 0 : vector<16x16xf32>, i32 -> vector<16x16xf32>
    %cst_100 = arith.constant 0xFF800000 : f32
    %195 = vector.broadcast %cst_100 : f32 to vector<16x16xf32>
    %196 = arith.select %28, %194, %195 : vector<16x16xi1>, vector<16x16xf32>
    %197 = arith.maximumf %193, %196 : vector<16x16xf32>
    %c14_i32_101 = arith.constant 14 : i32
    %198 = tpu.dynamic_rotate %185 by %c14_i32_101 dim 0 : vector<16x16xf32>, i32 -> vector<16x16xf32>
    %cst_102 = arith.constant 0xFF800000 : f32
    %199 = vector.broadcast %cst_102 : f32 to vector<16x16xf32>
    %200 = arith.select %37, %198, %199 : vector<16x16xi1>, vector<16x16xf32>
    %201 = arith.maximumf %197, %200 : vector<16x16xf32>
    %c2_i32_103 = arith.constant 2 : i32
    %202 = tpu.dynamic_rotate %201 by %c2_i32_103 dim 1 : vector<16x16xf32>, i32 -> vector<16x16xf32>
    %cst_104 = arith.constant 0xFF800000 : f32
    %203 = vector.broadcast %cst_104 : f32 to vector<16x16xf32>
    %204 = arith.select %46, %202, %203 : vector<16x16xi1>, vector<16x16xf32>
    %205 = arith.maximumf %201, %204 : vector<16x16xf32>
    %c1_i32_105 = arith.constant 1 : i32
    %206 = tpu.dynamic_rotate %201 by %c1_i32_105 dim 1 : vector<16x16xf32>, i32 -> vector<16x16xf32>
    %cst_106 = arith.constant 0xFF800000 : f32
    %207 = vector.broadcast %cst_106 : f32 to vector<16x16xf32>
    %208 = arith.select %55, %206, %207 : vector<16x16xi1>, vector<16x16xf32>
    %209 = arith.maximumf %205, %208 : vector<16x16xf32>
    %c15_i32_107 = arith.constant 15 : i32
    %210 = tpu.dynamic_rotate %201 by %c15_i32_107 dim 1 : vector<16x16xf32>, i32 -> vector<16x16xf32>
    %cst_108 = arith.constant 0xFF800000 : f32
    %211 = vector.broadcast %cst_108 : f32 to vector<16x16xf32>
    %212 = arith.select %64, %210, %211 : vector<16x16xi1>, vector<16x16xf32>
    %213 = arith.maximumf %209, %212 : vector<16x16xf32>
    %c14_i32_109 = arith.constant 14 : i32
    %214 = tpu.dynamic_rotate %201 by %c14_i32_109 dim 1 : vector<16x16xf32>, i32 -> vector<16x16xf32>
    %cst_110 = arith.constant 0xFF800000 : f32
    %215 = vector.broadcast %cst_110 : f32 to vector<16x16xf32>
    %216 = arith.select %73, %214, %215 : vector<16x16xi1>, vector<16x16xf32>
    %217 = arith.maximumf %213, %216 : vector<16x16xf32>
    %c2_i32_111 = arith.constant 2 : i32
    %218 = tpu.dynamic_rotate %217 by %c2_i32_111 dim 0 : vector<16x16xf32>, i32 -> vector<16x16xf32>
    %cst_112 = arith.constant 0xFF800000 : f32
    %219 = vector.broadcast %cst_112 : f32 to vector<16x16xf32>
    %220 = arith.select %10, %218, %219 : vector<16x16xi1>, vector<16x16xf32>
    %221 = arith.maximumf %217, %220 : vector<16x16xf32>
    %c1_i32_113 = arith.constant 1 : i32
    %222 = tpu.dynamic_rotate %217 by %c1_i32_113 dim 0 : vector<16x16xf32>, i32 -> vector<16x16xf32>
    %cst_114 = arith.constant 0xFF800000 : f32
    %223 = vector.broadcast %cst_114 : f32 to vector<16x16xf32>
    %224 = arith.select %19, %222, %223 : vector<16x16xi1>, vector<16x16xf32>
    %225 = arith.maximumf %221, %224 : vector<16x16xf32>
    %c15_i32_115 = arith.constant 15 : i32
    %226 = tpu.dynamic_rotate %217 by %c15_i32_115 dim 0 : vector<16x16xf32>, i32 -> vector<16x16xf32>
    %cst_116 = arith.constant 0xFF800000 : f32
    %227 = vector.broadcast %cst_116 : f32 to vector<16x16xf32>
    %228 = arith.select %28, %226, %227 : vector<16x16xi1>, vector<16x16xf32>
    %229 = arith.maximumf %225, %228 : vector<16x16xf32>
    %c14_i32_117 = arith.constant 14 : i32
    %230 = tpu.dynamic_rotate %217 by %c14_i32_117 dim 0 : vector<16x16xf32>, i32 -> vector<16x16xf32>
    %cst_118 = arith.constant 0xFF800000 : f32
    %231 = vector.broadcast %cst_118 : f32 to vector<16x16xf32>
    %232 = arith.select %37, %230, %231 : vector<16x16xi1>, vector<16x16xf32>
    %233 = arith.maximumf %229, %232 : vector<16x16xf32>
    %c2_i32_119 = arith.constant 2 : i32
    %234 = tpu.dynamic_rotate %233 by %c2_i32_119 dim 1 : vector<16x16xf32>, i32 -> vector<16x16xf32>
    %cst_120 = arith.constant 0xFF800000 : f32
    %235 = vector.broadcast %cst_120 : f32 to vector<16x16xf32>
    %236 = arith.select %46, %234, %235 : vector<16x16xi1>, vector<16x16xf32>
    %237 = arith.maximumf %233, %236 : vector<16x16xf32>
    %c1_i32_121 = arith.constant 1 : i32
    %238 = tpu.dynamic_rotate %233 by %c1_i32_121 dim 1 : vector<16x16xf32>, i32 -> vector<16x16xf32>
    %cst_122 = arith.constant 0xFF800000 : f32
    %239 = vector.broadcast %cst_122 : f32 to vector<16x16xf32>
    %240 = arith.select %55, %238, %239 : vector<16x16xi1>, vector<16x16xf32>
    %241 = arith.maximumf %237, %240 : vector<16x16xf32>
    %c15_i32_123 = arith.constant 15 : i32
    %242 = tpu.dynamic_rotate %233 by %c15_i32_123 dim 1 : vector<16x16xf32>, i32 -> vector<16x16xf32>
    %cst_124 = arith.constant 0xFF800000 : f32
    %243 = vector.broadcast %cst_124 : f32 to vector<16x16xf32>
    %244 = arith.select %64, %242, %243 : vector<16x16xi1>, vector<16x16xf32>
    %245 = arith.maximumf %241, %244 : vector<16x16xf32>
    %c14_i32_125 = arith.constant 14 : i32
    %246 = tpu.dynamic_rotate %233 by %c14_i32_125 dim 1 : vector<16x16xf32>, i32 -> vector<16x16xf32>
    %cst_126 = arith.constant 0xFF800000 : f32
    %247 = vector.broadcast %cst_126 : f32 to vector<16x16xf32>
    %248 = arith.select %73, %246, %247 : vector<16x16xi1>, vector<16x16xf32>
    %249 = arith.maximumf %245, %248 : vector<16x16xf32>
    %c2_i32_127 = arith.constant 2 : i32
    %250 = tpu.dynamic_rotate %249 by %c2_i32_127 dim 0 : vector<16x16xf32>, i32 -> vector<16x16xf32>
    %cst_128 = arith.constant 0xFF800000 : f32
    %251 = vector.broadcast %cst_128 : f32 to vector<16x16xf32>
    %252 = arith.select %10, %250, %251 : vector<16x16xi1>, vector<16x16xf32>
    %253 = arith.maximumf %249, %252 : vector<16x16xf32>
    %c1_i32_129 = arith.constant 1 : i32
    %254 = tpu.dynamic_rotate %249 by %c1_i32_129 dim 0 : vector<16x16xf32>, i32 -> vector<16x16xf32>
    %cst_130 = arith.constant 0xFF800000 : f32
    %255 = vector.broadcast %cst_130 : f32 to vector<16x16xf32>
    %256 = arith.select %19, %254, %255 : vector<16x16xi1>, vector<16x16xf32>
    %257 = arith.maximumf %253, %256 : vector<16x16xf32>
    %c15_i32_131 = arith.constant 15 : i32
    %258 = tpu.dynamic_rotate %249 by %c15_i32_131 dim 0 : vector<16x16xf32>, i32 -> vector<16x16xf32>
    %cst_132 = arith.constant 0xFF800000 : f32
    %259 = vector.broadcast %cst_132 : f32 to vector<16x16xf32>
    %260 = arith.select %28, %258, %259 : vector<16x16xi1>, vector<16x16xf32>
    %261 = arith.maximumf %257, %260 : vector<16x16xf32>
    %c14_i32_133 = arith.constant 14 : i32
    %262 = tpu.dynamic_rotate %249 by %c14_i32_133 dim 0 : vector<16x16xf32>, i32 -> vector<16x16xf32>
    %cst_134 = arith.constant 0xFF800000 : f32
    %263 = vector.broadcast %cst_134 : f32 to vector<16x16xf32>
    %264 = arith.select %37, %262, %263 : vector<16x16xi1>, vector<16x16xf32>
    %265 = arith.maximumf %261, %264 : vector<16x16xf32>
    %c2_i32_135 = arith.constant 2 : i32
    %266 = tpu.dynamic_rotate %265 by %c2_i32_135 dim 1 : vector<16x16xf32>, i32 -> vector<16x16xf32>
    %cst_136 = arith.constant 0xFF800000 : f32
    %267 = vector.broadcast %cst_136 : f32 to vector<16x16xf32>
    %268 = arith.select %46, %266, %267 : vector<16x16xi1>, vector<16x16xf32>
    %269 = arith.maximumf %265, %268 : vector<16x16xf32>
    %c1_i32_137 = arith.constant 1 : i32
    %270 = tpu.dynamic_rotate %265 by %c1_i32_137 dim 1 : vector<16x16xf32>, i32 -> vector<16x16xf32>
    %cst_138 = arith.constant 0xFF800000 : f32
    %271 = vector.broadcast %cst_138 : f32 to vector<16x16xf32>
    %272 = arith.select %55, %270, %271 : vector<16x16xi1>, vector<16x16xf32>
    %273 = arith.maximumf %269, %272 : vector<16x16xf32>
    %c15_i32_139 = arith.constant 15 : i32
    %274 = tpu.dynamic_rotate %265 by %c15_i32_139 dim 1 : vector<16x16xf32>, i32 -> vector<16x16xf32>
    %cst_140 = arith.constant 0xFF800000 : f32
    %275 = vector.broadcast %cst_140 : f32 to vector<16x16xf32>
    %276 = arith.select %64, %274, %275 : vector<16x16xi1>, vector<16x16xf32>
    %277 = arith.maximumf %273, %276 : vector<16x16xf32>
    %c14_i32_141 = arith.constant 14 : i32
    %278 = tpu.dynamic_rotate %265 by %c14_i32_141 dim 1 : vector<16x16xf32>, i32 -> vector<16x16xf32>
    %cst_142 = arith.constant 0xFF800000 : f32
    %279 = vector.broadcast %cst_142 : f32 to vector<16x16xf32>
    %280 = arith.select %73, %278, %279 : vector<16x16xi1>, vector<16x16xf32>
    %281 = arith.maximumf %277, %280 : vector<16x16xf32>
    %c0_143 = arith.constant 0 : index
    %c0_144 = arith.constant 0 : index
    %c1_145 = arith.constant 1 : index
    %c0_146 = arith.constant 0 : index
    %c0_147 = arith.constant 0 : index
    %282 = vector.load %arg3[%c0_143, %c0_144, %c1_145, %c0_146, %c0_147] : memref<1x4x4x16x16xf32, #tpu.memory_space<vmem>>, vector<1x1x1x16x16xf32>
    %283 = vector.shape_cast %282 : vector<1x1x1x16x16xf32> to vector<16x16xf32>
    %284 = vector.shape_cast %185 : vector<16x16xf32> to vector<1x1x1x16x16xf32>
    tpu.vector_store %arg3[%c0_143, %c0_144, %c1_145, %c0_146, %c0_147], %284 {strides = array<i32>} : memref<1x4x4x16x16xf32, #tpu.memory_space<vmem>>, vector<1x1x1x16x16xf32>,
    %c0_148 = arith.constant 0 : index
    %c1_149 = arith.constant 1 : index
    %c1_150 = arith.constant 1 : index
    %c0_151 = arith.constant 0 : index
    %c0_152 = arith.constant 0 : index
    %285 = vector.load %arg3[%c0_148, %c1_149, %c1_150, %c0_151, %c0_152] : memref<1x4x4x16x16xf32, #tpu.memory_space<vmem>>, vector<1x1x1x16x16xf32>
    %286 = vector.shape_cast %285 : vector<1x1x1x16x16xf32> to vector<16x16xf32>
    %287 = vector.shape_cast %217 : vector<16x16xf32> to vector<1x1x1x16x16xf32>
    tpu.vector_store %arg3[%c0_148, %c1_149, %c1_150, %c0_151, %c0_152], %287 {strides = array<i32>} : memref<1x4x4x16x16xf32, #tpu.memory_space<vmem>>, vector<1x1x1x16x16xf32>,
    %c0_153 = arith.constant 0 : index
    %c2_154 = arith.constant 2 : index
    %c1_155 = arith.constant 1 : index
    %c0_156 = arith.constant 0 : index
    %c0_157 = arith.constant 0 : index
    %288 = vector.load %arg3[%c0_153, %c2_154, %c1_155, %c0_156, %c0_157] : memref<1x4x4x16x16xf32, #tpu.memory_space<vmem>>, vector<1x1x1x16x16xf32>
    %289 = vector.shape_cast %288 : vector<1x1x1x16x16xf32> to vector<16x16xf32>
    %290 = vector.shape_cast %249 : vector<16x16xf32> to vector<1x1x1x16x16xf32>
    tpu.vector_store %arg3[%c0_153, %c2_154, %c1_155, %c0_156, %c0_157], %290 {strides = array<i32>} : memref<1x4x4x16x16xf32, #tpu.memory_space<vmem>>, vector<1x1x1x16x16xf32>,
    %c0_158 = arith.constant 0 : index
    %c3_159 = arith.constant 3 : index
    %c1_160 = arith.constant 1 : index
    %c0_161 = arith.constant 0 : index
    %c0_162 = arith.constant 0 : index
    %291 = vector.load %arg3[%c0_158, %c3_159, %c1_160, %c0_161, %c0_162] : memref<1x4x4x16x16xf32, #tpu.memory_space<vmem>>, vector<1x1x1x16x16xf32>
    %292 = vector.shape_cast %291 : vector<1x1x1x16x16xf32> to vector<16x16xf32>
    %293 = vector.shape_cast %281 : vector<16x16xf32> to vector<1x1x1x16x16xf32>
    tpu.vector_store %arg3[%c0_158, %c3_159, %c1_160, %c0_161, %c0_162], %293 {strides = array<i32>} : memref<1x4x4x16x16xf32, #tpu.memory_space<vmem>>, vector<1x1x1x16x16xf32>,
    %c0_163 = arith.constant 0 : index
    %c2_164 = arith.constant 2 : index
    %c0_165 = arith.constant 0 : index
    %c0_166 = arith.constant 0 : index
    %294 = vector.load %arg2[%c0_163, %c2_164, %c0_165, %c0_166] : memref<1x4x16x16xf32, #tpu.memory_space<vmem>>, vector<1x1x16x16xf32>
    %295 = vector.shape_cast %294 : vector<1x1x16x16xf32> to vector<16x16xf32>
    %c2_i32_167 = arith.constant 2 : i32
    %296 = tpu.dynamic_rotate %295 by %c2_i32_167 dim 0 : vector<16x16xf32>, i32 -> vector<16x16xf32>
    %cst_168 = arith.constant 0xFF800000 : f32
    %297 = vector.broadcast %cst_168 : f32 to vector<16x16xf32>
    %298 = arith.select %10, %296, %297 : vector<16x16xi1>, vector<16x16xf32>
    %299 = arith.maximumf %295, %298 : vector<16x16xf32>
    %c1_i32_169 = arith.constant 1 : i32
    %300 = tpu.dynamic_rotate %295 by %c1_i32_169 dim 0 : vector<16x16xf32>, i32 -> vector<16x16xf32>
    %cst_170 = arith.constant 0xFF800000 : f32
    %301 = vector.broadcast %cst_170 : f32 to vector<16x16xf32>
    %302 = arith.select %19, %300, %301 : vector<16x16xi1>, vector<16x16xf32>
    %303 = arith.maximumf %299, %302 : vector<16x16xf32>
    %c15_i32_171 = arith.constant 15 : i32
    %304 = tpu.dynamic_rotate %295 by %c15_i32_171 dim 0 : vector<16x16xf32>, i32 -> vector<16x16xf32>
    %cst_172 = arith.constant 0xFF800000 : f32
    %305 = vector.broadcast %cst_172 : f32 to vector<16x16xf32>
    %306 = arith.select %28, %304, %305 : vector<16x16xi1>, vector<16x16xf32>
    %307 = arith.maximumf %303, %306 : vector<16x16xf32>
    %c14_i32_173 = arith.constant 14 : i32
    %308 = tpu.dynamic_rotate %295 by %c14_i32_173 dim 0 : vector<16x16xf32>, i32 -> vector<16x16xf32>
    %cst_174 = arith.constant 0xFF800000 : f32
    %309 = vector.broadcast %cst_174 : f32 to vector<16x16xf32>
    %310 = arith.select %37, %308, %309 : vector<16x16xi1>, vector<16x16xf32>
    %311 = arith.maximumf %307, %310 : vector<16x16xf32>
    %c2_i32_175 = arith.constant 2 : i32
    %312 = tpu.dynamic_rotate %311 by %c2_i32_175 dim 1 : vector<16x16xf32>, i32 -> vector<16x16xf32>
    %cst_176 = arith.constant 0xFF800000 : f32
    %313 = vector.broadcast %cst_176 : f32 to vector<16x16xf32>
    %314 = arith.select %46, %312, %313 : vector<16x16xi1>, vector<16x16xf32>
    %315 = arith.maximumf %311, %314 : vector<16x16xf32>
    %c1_i32_177 = arith.constant 1 : i32
    %316 = tpu.dynamic_rotate %311 by %c1_i32_177 dim 1 : vector<16x16xf32>, i32 -> vector<16x16xf32>
    %cst_178 = arith.constant 0xFF800000 : f32
    %317 = vector.broadcast %cst_178 : f32 to vector<16x16xf32>
    %318 = arith.select %55, %316, %317 : vector<16x16xi1>, vector<16x16xf32>
    %319 = arith.maximumf %315, %318 : vector<16x16xf32>
    %c15_i32_179 = arith.constant 15 : i32
    %320 = tpu.dynamic_rotate %311 by %c15_i32_179 dim 1 : vector<16x16xf32>, i32 -> vector<16x16xf32>
    %cst_180 = arith.constant 0xFF800000 : f32
    %321 = vector.broadcast %cst_180 : f32 to vector<16x16xf32>
    %322 = arith.select %64, %320, %321 : vector<16x16xi1>, vector<16x16xf32>
    %323 = arith.maximumf %319, %322 : vector<16x16xf32>
    %c14_i32_181 = arith.constant 14 : i32
    %324 = tpu.dynamic_rotate %311 by %c14_i32_181 dim 1 : vector<16x16xf32>, i32 -> vector<16x16xf32>
    %cst_182 = arith.constant 0xFF800000 : f32
    %325 = vector.broadcast %cst_182 : f32 to vector<16x16xf32>
    %326 = arith.select %73, %324, %325 : vector<16x16xi1>, vector<16x16xf32>
    %327 = arith.maximumf %323, %326 : vector<16x16xf32>
    %c2_i32_183 = arith.constant 2 : i32
    %328 = tpu.dynamic_rotate %327 by %c2_i32_183 dim 0 : vector<16x16xf32>, i32 -> vector<16x16xf32>
    %cst_184 = arith.constant 0xFF800000 : f32
    %329 = vector.broadcast %cst_184 : f32 to vector<16x16xf32>
    %330 = arith.select %10, %328, %329 : vector<16x16xi1>, vector<16x16xf32>
    %331 = arith.maximumf %327, %330 : vector<16x16xf32>
    %c1_i32_185 = arith.constant 1 : i32
    %332 = tpu.dynamic_rotate %327 by %c1_i32_185 dim 0 : vector<16x16xf32>, i32 -> vector<16x16xf32>
    %cst_186 = arith.constant 0xFF800000 : f32
    %333 = vector.broadcast %cst_186 : f32 to vector<16x16xf32>
    %334 = arith.select %19, %332, %333 : vector<16x16xi1>, vector<16x16xf32>
    %335 = arith.maximumf %331, %334 : vector<16x16xf32>
    %c15_i32_187 = arith.constant 15 : i32
    %336 = tpu.dynamic_rotate %327 by %c15_i32_187 dim 0 : vector<16x16xf32>, i32 -> vector<16x16xf32>
    %cst_188 = arith.constant 0xFF800000 : f32
    %337 = vector.broadcast %cst_188 : f32 to vector<16x16xf32>
    %338 = arith.select %28, %336, %337 : vector<16x16xi1>, vector<16x16xf32>
    %339 = arith.maximumf %335, %338 : vector<16x16xf32>
    %c14_i32_189 = arith.constant 14 : i32
    %340 = tpu.dynamic_rotate %327 by %c14_i32_189 dim 0 : vector<16x16xf32>, i32 -> vector<16x16xf32>
    %cst_190 = arith.constant 0xFF800000 : f32
    %341 = vector.broadcast %cst_190 : f32 to vector<16x16xf32>
    %342 = arith.select %37, %340, %341 : vector<16x16xi1>, vector<16x16xf32>
    %343 = arith.maximumf %339, %342 : vector<16x16xf32>
    %c2_i32_191 = arith.constant 2 : i32
    %344 = tpu.dynamic_rotate %343 by %c2_i32_191 dim 1 : vector<16x16xf32>, i32 -> vector<16x16xf32>
    %cst_192 = arith.constant 0xFF800000 : f32
    %345 = vector.broadcast %cst_192 : f32 to vector<16x16xf32>
    %346 = arith.select %46, %344, %345 : vector<16x16xi1>, vector<16x16xf32>
    %347 = arith.maximumf %343, %346 : vector<16x16xf32>
    %c1_i32_193 = arith.constant 1 : i32
    %348 = tpu.dynamic_rotate %343 by %c1_i32_193 dim 1 : vector<16x16xf32>, i32 -> vector<16x16xf32>
    %cst_194 = arith.constant 0xFF800000 : f32
    %349 = vector.broadcast %cst_194 : f32 to vector<16x16xf32>
    %350 = arith.select %55, %348, %349 : vector<16x16xi1>, vector<16x16xf32>
    %351 = arith.maximumf %347, %350 : vector<16x16xf32>
    %c15_i32_195 = arith.constant 15 : i32
    %352 = tpu.dynamic_rotate %343 by %c15_i32_195 dim 1 : vector<16x16xf32>, i32 -> vector<16x16xf32>
    %cst_196 = arith.constant 0xFF800000 : f32
    %353 = vector.broadcast %cst_196 : f32 to vector<16x16xf32>
    %354 = arith.select %64, %352, %353 : vector<16x16xi1>, vector<16x16xf32>
    %355 = arith.maximumf %351, %354 : vector<16x16xf32>
    %c14_i32_197 = arith.constant 14 : i32
    %356 = tpu.dynamic_rotate %343 by %c14_i32_197 dim 1 : vector<16x16xf32>, i32 -> vector<16x16xf32>
    %cst_198 = arith.constant 0xFF800000 : f32
    %357 = vector.broadcast %cst_198 : f32 to vector<16x16xf32>
    %358 = arith.select %73, %356, %357 : vector<16x16xi1>, vector<16x16xf32>
    %359 = arith.maximumf %355, %358 : vector<16x16xf32>
    %c2_i32_199 = arith.constant 2 : i32
    %360 = tpu.dynamic_rotate %359 by %c2_i32_199 dim 0 : vector<16x16xf32>, i32 -> vector<16x16xf32>
    %cst_200 = arith.constant 0xFF800000 : f32
    %361 = vector.broadcast %cst_200 : f32 to vector<16x16xf32>
    %362 = arith.select %10, %360, %361 : vector<16x16xi1>, vector<16x16xf32>
    %363 = arith.maximumf %359, %362 : vector<16x16xf32>
    %c1_i32_201 = arith.constant 1 : i32
    %364 = tpu.dynamic_rotate %359 by %c1_i32_201 dim 0 : vector<16x16xf32>, i32 -> vector<16x16xf32>
    %cst_202 = arith.constant 0xFF800000 : f32
    %365 = vector.broadcast %cst_202 : f32 to vector<16x16xf32>
    %366 = arith.select %19, %364, %365 : vector<16x16xi1>, vector<16x16xf32>
    %367 = arith.maximumf %363, %366 : vector<16x16xf32>
    %c15_i32_203 = arith.constant 15 : i32
    %368 = tpu.dynamic_rotate %359 by %c15_i32_203 dim 0 : vector<16x16xf32>, i32 -> vector<16x16xf32>
    %cst_204 = arith.constant 0xFF800000 : f32
    %369 = vector.broadcast %cst_204 : f32 to vector<16x16xf32>
    %370 = arith.select %28, %368, %369 : vector<16x16xi1>, vector<16x16xf32>
    %371 = arith.maximumf %367, %370 : vector<16x16xf32>
    %c14_i32_205 = arith.constant 14 : i32
    %372 = tpu.dynamic_rotate %359 by %c14_i32_205 dim 0 : vector<16x16xf32>, i32 -> vector<16x16xf32>
    %cst_206 = arith.constant 0xFF800000 : f32
    %373 = vector.broadcast %cst_206 : f32 to vector<16x16xf32>
    %374 = arith.select %37, %372, %373 : vector<16x16xi1>, vector<16x16xf32>
    %375 = arith.maximumf %371, %374 : vector<16x16xf32>
    %c2_i32_207 = arith.constant 2 : i32
    %376 = tpu.dynamic_rotate %375 by %c2_i32_207 dim 1 : vector<16x16xf32>, i32 -> vector<16x16xf32>
    %cst_208 = arith.constant 0xFF800000 : f32
    %377 = vector.broadcast %cst_208 : f32 to vector<16x16xf32>
    %378 = arith.select %46, %376, %377 : vector<16x16xi1>, vector<16x16xf32>
    %379 = arith.maximumf %375, %378 : vector<16x16xf32>
    %c1_i32_209 = arith.constant 1 : i32
    %380 = tpu.dynamic_rotate %375 by %c1_i32_209 dim 1 : vector<16x16xf32>, i32 -> vector<16x16xf32>
    %cst_210 = arith.constant 0xFF800000 : f32
    %381 = vector.broadcast %cst_210 : f32 to vector<16x16xf32>
    %382 = arith.select %55, %380, %381 : vector<16x16xi1>, vector<16x16xf32>
    %383 = arith.maximumf %379, %382 : vector<16x16xf32>
    %c15_i32_211 = arith.constant 15 : i32
    %384 = tpu.dynamic_rotate %375 by %c15_i32_211 dim 1 : vector<16x16xf32>, i32 -> vector<16x16xf32>
    %cst_212 = arith.constant 0xFF800000 : f32
    %385 = vector.broadcast %cst_212 : f32 to vector<16x16xf32>
    %386 = arith.select %64, %384, %385 : vector<16x16xi1>, vector<16x16xf32>
    %387 = arith.maximumf %383, %386 : vector<16x16xf32>
    %c14_i32_213 = arith.constant 14 : i32
    %388 = tpu.dynamic_rotate %375 by %c14_i32_213 dim 1 : vector<16x16xf32>, i32 -> vector<16x16xf32>
    %cst_214 = arith.constant 0xFF800000 : f32
    %389 = vector.broadcast %cst_214 : f32 to vector<16x16xf32>
    %390 = arith.select %73, %388, %389 : vector<16x16xi1>, vector<16x16xf32>
    %391 = arith.maximumf %387, %390 : vector<16x16xf32>
    %c0_215 = arith.constant 0 : index
    %c0_216 = arith.constant 0 : index
    %c2_217 = arith.constant 2 : index
    %c0_218 = arith.constant 0 : index
    %c0_219 = arith.constant 0 : index
    %392 = vector.load %arg3[%c0_215, %c0_216, %c2_217, %c0_218, %c0_219] : memref<1x4x4x16x16xf32, #tpu.memory_space<vmem>>, vector<1x1x1x16x16xf32>
    %393 = vector.shape_cast %392 : vector<1x1x1x16x16xf32> to vector<16x16xf32>
    %394 = vector.shape_cast %295 : vector<16x16xf32> to vector<1x1x1x16x16xf32>
    tpu.vector_store %arg3[%c0_215, %c0_216, %c2_217, %c0_218, %c0_219], %394 {strides = array<i32>} : memref<1x4x4x16x16xf32, #tpu.memory_space<vmem>>, vector<1x1x1x16x16xf32>,
    %c0_220 = arith.constant 0 : index
    %c1_221 = arith.constant 1 : index
    %c2_222 = arith.constant 2 : index
    %c0_223 = arith.constant 0 : index
    %c0_224 = arith.constant 0 : index
    %395 = vector.load %arg3[%c0_220, %c1_221, %c2_222, %c0_223, %c0_224] : memref<1x4x4x16x16xf32, #tpu.memory_space<vmem>>, vector<1x1x1x16x16xf32>
    %396 = vector.shape_cast %395 : vector<1x1x1x16x16xf32> to vector<16x16xf32>
    %397 = vector.shape_cast %327 : vector<16x16xf32> to vector<1x1x1x16x16xf32>
    tpu.vector_store %arg3[%c0_220, %c1_221, %c2_222, %c0_223, %c0_224], %397 {strides = array<i32>} : memref<1x4x4x16x16xf32, #tpu.memory_space<vmem>>, vector<1x1x1x16x16xf32>,
    %c0_225 = arith.constant 0 : index
    %c2_226 = arith.constant 2 : index
    %c2_227 = arith.constant 2 : index
    %c0_228 = arith.constant 0 : index
    %c0_229 = arith.constant 0 : index
    %398 = vector.load %arg3[%c0_225, %c2_226, %c2_227, %c0_228, %c0_229] : memref<1x4x4x16x16xf32, #tpu.memory_space<vmem>>, vector<1x1x1x16x16xf32>
    %399 = vector.shape_cast %398 : vector<1x1x1x16x16xf32> to vector<16x16xf32>
    %400 = vector.shape_cast %359 : vector<16x16xf32> to vector<1x1x1x16x16xf32>
    tpu.vector_store %arg3[%c0_225, %c2_226, %c2_227, %c0_228, %c0_229], %400 {strides = array<i32>} : memref<1x4x4x16x16xf32, #tpu.memory_space<vmem>>, vector<1x1x1x16x16xf32>,
    %c0_230 = arith.constant 0 : index
    %c3_231 = arith.constant 3 : index
    %c2_232 = arith.constant 2 : index
    %c0_233 = arith.constant 0 : index
    %c0_234 = arith.constant 0 : index
    %401 = vector.load %arg3[%c0_230, %c3_231, %c2_232, %c0_233, %c0_234] : memref<1x4x4x16x16xf32, #tpu.memory_space<vmem>>, vector<1x1x1x16x16xf32>
    %402 = vector.shape_cast %401 : vector<1x1x1x16x16xf32> to vector<16x16xf32>
    %403 = vector.shape_cast %391 : vector<16x16xf32> to vector<1x1x1x16x16xf32>
    tpu.vector_store %arg3[%c0_230, %c3_231, %c2_232, %c0_233, %c0_234], %403 {strides = array<i32>} : memref<1x4x4x16x16xf32, #tpu.memory_space<vmem>>, vector<1x1x1x16x16xf32>,
    %c0_235 = arith.constant 0 : index
    %c3_236 = arith.constant 3 : index
    %c0_237 = arith.constant 0 : index
    %c0_238 = arith.constant 0 : index
    %404 = vector.load %arg2[%c0_235, %c3_236, %c0_237, %c0_238] : memref<1x4x16x16xf32, #tpu.memory_space<vmem>>, vector<1x1x16x16xf32>
    %405 = vector.shape_cast %404 : vector<1x1x16x16xf32> to vector<16x16xf32>
    %c2_i32_239 = arith.constant 2 : i32
    %406 = tpu.dynamic_rotate %405 by %c2_i32_239 dim 0 : vector<16x16xf32>, i32 -> vector<16x16xf32>
    %cst_240 = arith.constant 0xFF800000 : f32
    %407 = vector.broadcast %cst_240 : f32 to vector<16x16xf32>
    %408 = arith.select %10, %406, %407 : vector<16x16xi1>, vector<16x16xf32>
    %409 = arith.maximumf %405, %408 : vector<16x16xf32>
    %c1_i32_241 = arith.constant 1 : i32
    %410 = tpu.dynamic_rotate %405 by %c1_i32_241 dim 0 : vector<16x16xf32>, i32 -> vector<16x16xf32>
    %cst_242 = arith.constant 0xFF800000 : f32
    %411 = vector.broadcast %cst_242 : f32 to vector<16x16xf32>
    %412 = arith.select %19, %410, %411 : vector<16x16xi1>, vector<16x16xf32>
    %413 = arith.maximumf %409, %412 : vector<16x16xf32>
    %c15_i32_243 = arith.constant 15 : i32
    %414 = tpu.dynamic_rotate %405 by %c15_i32_243 dim 0 : vector<16x16xf32>, i32 -> vector<16x16xf32>
    %cst_244 = arith.constant 0xFF800000 : f32
    %415 = vector.broadcast %cst_244 : f32 to vector<16x16xf32>
    %416 = arith.select %28, %414, %415 : vector<16x16xi1>, vector<16x16xf32>
    %417 = arith.maximumf %413, %416 : vector<16x16xf32>
    %c14_i32_245 = arith.constant 14 : i32
    %418 = tpu.dynamic_rotate %405 by %c14_i32_245 dim 0 : vector<16x16xf32>, i32 -> vector<16x16xf32>
    %cst_246 = arith.constant 0xFF800000 : f32
    %419 = vector.broadcast %cst_246 : f32 to vector<16x16xf32>
    %420 = arith.select %37, %418, %419 : vector<16x16xi1>, vector<16x16xf32>
    %421 = arith.maximumf %417, %420 : vector<16x16xf32>
    %c2_i32_247 = arith.constant 2 : i32
    %422 = tpu.dynamic_rotate %421 by %c2_i32_247 dim 1 : vector<16x16xf32>, i32 -> vector<16x16xf32>
    %cst_248 = arith.constant 0xFF800000 : f32
    %423 = vector.broadcast %cst_248 : f32 to vector<16x16xf32>
    %424 = arith.select %46, %422, %423 : vector<16x16xi1>, vector<16x16xf32>
    %425 = arith.maximumf %421, %424 : vector<16x16xf32>
    %c1_i32_249 = arith.constant 1 : i32
    %426 = tpu.dynamic_rotate %421 by %c1_i32_249 dim 1 : vector<16x16xf32>, i32 -> vector<16x16xf32>
    %cst_250 = arith.constant 0xFF800000 : f32
    %427 = vector.broadcast %cst_250 : f32 to vector<16x16xf32>
    %428 = arith.select %55, %426, %427 : vector<16x16xi1>, vector<16x16xf32>
    %429 = arith.maximumf %425, %428 : vector<16x16xf32>
    %c15_i32_251 = arith.constant 15 : i32
    %430 = tpu.dynamic_rotate %421 by %c15_i32_251 dim 1 : vector<16x16xf32>, i32 -> vector<16x16xf32>
    %cst_252 = arith.constant 0xFF800000 : f32
    %431 = vector.broadcast %cst_252 : f32 to vector<16x16xf32>
    %432 = arith.select %64, %430, %431 : vector<16x16xi1>, vector<16x16xf32>
    %433 = arith.maximumf %429, %432 : vector<16x16xf32>
    %c14_i32_253 = arith.constant 14 : i32
    %434 = tpu.dynamic_rotate %421 by %c14_i32_253 dim 1 : vector<16x16xf32>, i32 -> vector<16x16xf32>
    %cst_254 = arith.constant 0xFF800000 : f32
    %435 = vector.broadcast %cst_254 : f32 to vector<16x16xf32>
    %436 = arith.select %73, %434, %435 : vector<16x16xi1>, vector<16x16xf32>
    %437 = arith.maximumf %433, %436 : vector<16x16xf32>
    %c2_i32_255 = arith.constant 2 : i32
    %438 = tpu.dynamic_rotate %437 by %c2_i32_255 dim 0 : vector<16x16xf32>, i32 -> vector<16x16xf32>
    %cst_256 = arith.constant 0xFF800000 : f32
    %439 = vector.broadcast %cst_256 : f32 to vector<16x16xf32>
    %440 = arith.select %10, %438, %439 : vector<16x16xi1>, vector<16x16xf32>
    %441 = arith.maximumf %437, %440 : vector<16x16xf32>
    %c1_i32_257 = arith.constant 1 : i32
    %442 = tpu.dynamic_rotate %437 by %c1_i32_257 dim 0 : vector<16x16xf32>, i32 -> vector<16x16xf32>
    %cst_258 = arith.constant 0xFF800000 : f32
    %443 = vector.broadcast %cst_258 : f32 to vector<16x16xf32>
    %444 = arith.select %19, %442, %443 : vector<16x16xi1>, vector<16x16xf32>
    %445 = arith.maximumf %441, %444 : vector<16x16xf32>
    %c15_i32_259 = arith.constant 15 : i32
    %446 = tpu.dynamic_rotate %437 by %c15_i32_259 dim 0 : vector<16x16xf32>, i32 -> vector<16x16xf32>
    %cst_260 = arith.constant 0xFF800000 : f32
    %447 = vector.broadcast %cst_260 : f32 to vector<16x16xf32>
    %448 = arith.select %28, %446, %447 : vector<16x16xi1>, vector<16x16xf32>
    %449 = arith.maximumf %445, %448 : vector<16x16xf32>
    %c14_i32_261 = arith.constant 14 : i32
    %450 = tpu.dynamic_rotate %437 by %c14_i32_261 dim 0 : vector<16x16xf32>, i32 -> vector<16x16xf32>
    %cst_262 = arith.constant 0xFF800000 : f32
    %451 = vector.broadcast %cst_262 : f32 to vector<16x16xf32>
    %452 = arith.select %37, %450, %451 : vector<16x16xi1>, vector<16x16xf32>
    %453 = arith.maximumf %449, %452 : vector<16x16xf32>
    %c2_i32_263 = arith.constant 2 : i32
    %454 = tpu.dynamic_rotate %453 by %c2_i32_263 dim 1 : vector<16x16xf32>, i32 -> vector<16x16xf32>
    %cst_264 = arith.constant 0xFF800000 : f32
    %455 = vector.broadcast %cst_264 : f32 to vector<16x16xf32>
    %456 = arith.select %46, %454, %455 : vector<16x16xi1>, vector<16x16xf32>
    %457 = arith.maximumf %453, %456 : vector<16x16xf32>
    %c1_i32_265 = arith.constant 1 : i32
    %458 = tpu.dynamic_rotate %453 by %c1_i32_265 dim 1 : vector<16x16xf32>, i32 -> vector<16x16xf32>
    %cst_266 = arith.constant 0xFF800000 : f32
    %459 = vector.broadcast %cst_266 : f32 to vector<16x16xf32>
    %460 = arith.select %55, %458, %459 : vector<16x16xi1>, vector<16x16xf32>
    %461 = arith.maximumf %457, %460 : vector<16x16xf32>
    %c15_i32_267 = arith.constant 15 : i32
    %462 = tpu.dynamic_rotate %453 by %c15_i32_267 dim 1 : vector<16x16xf32>, i32 -> vector<16x16xf32>
    %cst_268 = arith.constant 0xFF800000 : f32
    %463 = vector.broadcast %cst_268 : f32 to vector<16x16xf32>
    %464 = arith.select %64, %462, %463 : vector<16x16xi1>, vector<16x16xf32>
    %465 = arith.maximumf %461, %464 : vector<16x16xf32>
    %c14_i32_269 = arith.constant 14 : i32
    %466 = tpu.dynamic_rotate %453 by %c14_i32_269 dim 1 : vector<16x16xf32>, i32 -> vector<16x16xf32>
    %cst_270 = arith.constant 0xFF800000 : f32
    %467 = vector.broadcast %cst_270 : f32 to vector<16x16xf32>
    %468 = arith.select %73, %466, %467 : vector<16x16xi1>, vector<16x16xf32>
    %469 = arith.maximumf %465, %468 : vector<16x16xf32>
    %c2_i32_271 = arith.constant 2 : i32
    %470 = tpu.dynamic_rotate %469 by %c2_i32_271 dim 0 : vector<16x16xf32>, i32 -> vector<16x16xf32>
    %cst_272 = arith.constant 0xFF800000 : f32
    %471 = vector.broadcast %cst_272 : f32 to vector<16x16xf32>
    %472 = arith.select %10, %470, %471 : vector<16x16xi1>, vector<16x16xf32>
    %473 = arith.maximumf %469, %472 : vector<16x16xf32>
    %c1_i32_273 = arith.constant 1 : i32
    %474 = tpu.dynamic_rotate %469 by %c1_i32_273 dim 0 : vector<16x16xf32>, i32 -> vector<16x16xf32>
    %cst_274 = arith.constant 0xFF800000 : f32
    %475 = vector.broadcast %cst_274 : f32 to vector<16x16xf32>
    %476 = arith.select %19, %474, %475 : vector<16x16xi1>, vector<16x16xf32>
    %477 = arith.maximumf %473, %476 : vector<16x16xf32>
    %c15_i32_275 = arith.constant 15 : i32
    %478 = tpu.dynamic_rotate %469 by %c15_i32_275 dim 0 : vector<16x16xf32>, i32 -> vector<16x16xf32>
    %cst_276 = arith.constant 0xFF800000 : f32
    %479 = vector.broadcast %cst_276 : f32 to vector<16x16xf32>
    %480 = arith.select %28, %478, %479 : vector<16x16xi1>, vector<16x16xf32>
    %481 = arith.maximumf %477, %480 : vector<16x16xf32>
    %c14_i32_277 = arith.constant 14 : i32
    %482 = tpu.dynamic_rotate %469 by %c14_i32_277 dim 0 : vector<16x16xf32>, i32 -> vector<16x16xf32>
    %cst_278 = arith.constant 0xFF800000 : f32
    %483 = vector.broadcast %cst_278 : f32 to vector<16x16xf32>
    %484 = arith.select %37, %482, %483 : vector<16x16xi1>, vector<16x16xf32>
    %485 = arith.maximumf %481, %484 : vector<16x16xf32>
    %c2_i32_279 = arith.constant 2 : i32
    %486 = tpu.dynamic_rotate %485 by %c2_i32_279 dim 1 : vector<16x16xf32>, i32 -> vector<16x16xf32>
    %cst_280 = arith.constant 0xFF800000 : f32
    %487 = vector.broadcast %cst_280 : f32 to vector<16x16xf32>
    %488 = arith.select %46, %486, %487 : vector<16x16xi1>, vector<16x16xf32>
    %489 = arith.maximumf %485, %488 : vector<16x16xf32>
    %c1_i32_281 = arith.constant 1 : i32
    %490 = tpu.dynamic_rotate %485 by %c1_i32_281 dim 1 : vector<16x16xf32>, i32 -> vector<16x16xf32>
    %cst_282 = arith.constant 0xFF800000 : f32
    %491 = vector.broadcast %cst_282 : f32 to vector<16x16xf32>
    %492 = arith.select %55, %490, %491 : vector<16x16xi1>, vector<16x16xf32>
    %493 = arith.maximumf %489, %492 : vector<16x16xf32>
    %c15_i32_283 = arith.constant 15 : i32
    %494 = tpu.dynamic_rotate %485 by %c15_i32_283 dim 1 : vector<16x16xf32>, i32 -> vector<16x16xf32>
    %cst_284 = arith.constant 0xFF800000 : f32
    %495 = vector.broadcast %cst_284 : f32 to vector<16x16xf32>
    %496 = arith.select %64, %494, %495 : vector<16x16xi1>, vector<16x16xf32>
    %497 = arith.maximumf %493, %496 : vector<16x16xf32>
    %c14_i32_285 = arith.constant 14 : i32
    %498 = tpu.dynamic_rotate %485 by %c14_i32_285 dim 1 : vector<16x16xf32>, i32 -> vector<16x16xf32>
    %cst_286 = arith.constant 0xFF800000 : f32
    %499 = vector.broadcast %cst_286 : f32 to vector<16x16xf32>
    %500 = arith.select %73, %498, %499 : vector<16x16xi1>, vector<16x16xf32>
    %501 = arith.maximumf %497, %500 : vector<16x16xf32>
    %c0_287 = arith.constant 0 : index
    %c0_288 = arith.constant 0 : index
    %c3_289 = arith.constant 3 : index
    %c0_290 = arith.constant 0 : index
    %c0_291 = arith.constant 0 : index
    %502 = vector.load %arg3[%c0_287, %c0_288, %c3_289, %c0_290, %c0_291] : memref<1x4x4x16x16xf32, #tpu.memory_space<vmem>>, vector<1x1x1x16x16xf32>
    %503 = vector.shape_cast %502 : vector<1x1x1x16x16xf32> to vector<16x16xf32>
    %504 = vector.shape_cast %405 : vector<16x16xf32> to vector<1x1x1x16x16xf32>
    tpu.vector_store %arg3[%c0_287, %c0_288, %c3_289, %c0_290, %c0_291], %504 {strides = array<i32>} : memref<1x4x4x16x16xf32, #tpu.memory_space<vmem>>, vector<1x1x1x16x16xf32>,
    %c0_292 = arith.constant 0 : index
    %c1_293 = arith.constant 1 : index
    %c3_294 = arith.constant 3 : index
    %c0_295 = arith.constant 0 : index
    %c0_296 = arith.constant 0 : index
    %505 = vector.load %arg3[%c0_292, %c1_293, %c3_294, %c0_295, %c0_296] : memref<1x4x4x16x16xf32, #tpu.memory_space<vmem>>, vector<1x1x1x16x16xf32>
    %506 = vector.shape_cast %505 : vector<1x1x1x16x16xf32> to vector<16x16xf32>
    %507 = vector.shape_cast %437 : vector<16x16xf32> to vector<1x1x1x16x16xf32>
    tpu.vector_store %arg3[%c0_292, %c1_293, %c3_294, %c0_295, %c0_296], %507 {strides = array<i32>} : memref<1x4x4x16x16xf32, #tpu.memory_space<vmem>>, vector<1x1x1x16x16xf32>,
    %c0_297 = arith.constant 0 : index
    %c2_298 = arith.constant 2 : index
    %c3_299 = arith.constant 3 : index
    %c0_300 = arith.constant 0 : index
    %c0_301 = arith.constant 0 : index
    %508 = vector.load %arg3[%c0_297, %c2_298, %c3_299, %c0_300, %c0_301] : memref<1x4x4x16x16xf32, #tpu.memory_space<vmem>>, vector<1x1x1x16x16xf32>
    %509 = vector.shape_cast %508 : vector<1x1x1x16x16xf32> to vector<16x16xf32>
    %510 = vector.shape_cast %469 : vector<16x16xf32> to vector<1x1x1x16x16xf32>
    tpu.vector_store %arg3[%c0_297, %c2_298, %c3_299, %c0_300, %c0_301], %510 {strides = array<i32>} : memref<1x4x4x16x16xf32, #tpu.memory_space<vmem>>, vector<1x1x1x16x16xf32>,
    %c0_302 = arith.constant 0 : index
    %c3_303 = arith.constant 3 : index
    %c3_304 = arith.constant 3 : index
    %c0_305 = arith.constant 0 : index
    %c0_306 = arith.constant 0 : index
    %511 = vector.load %arg3[%c0_302, %c3_303, %c3_304, %c0_305, %c0_306] : memref<1x4x4x16x16xf32, #tpu.memory_space<vmem>>, vector<1x1x1x16x16xf32>
    %512 = vector.shape_cast %511 : vector<1x1x1x16x16xf32> to vector<16x16xf32>
    %513 = vector.shape_cast %501 : vector<16x16xf32> to vector<1x1x1x16x16xf32>
    tpu.vector_store %arg3[%c0_302, %c3_303, %c3_304, %c0_305, %c0_306], %513 {strides = array<i32>} : memref<1x4x4x16x16xf32, #tpu.memory_space<vmem>>, vector<1x1x1x16x16xf32>,
    return
  }
  func.func @transform_0(%arg0: i32, %arg1: i32) -> (i32, i32, i32, i32) {
    %c0_i32 = arith.constant 0 : i32
    %c0_i32_0 = arith.constant 0 : i32
    %c0_i32_1 = arith.constant 0 : i32
    return %arg0, %arg1, %c0_i32, %c0_i32_0 : i32, i32, i32, i32
  }
  func.func @transform_1(%arg0: i32, %arg1: i32) -> (i32, i32, i32, i32, i32) {
    %c0_i32 = arith.constant 0 : i32
    %c0_i32_0 = arith.constant 0 : i32
    %c0_i32_1 = arith.constant 0 : i32
    %c0_i32_2 = arith.constant 0 : i32
    return %arg0, %c0_i32, %arg1, %c0_i32_0, %c0_i32_1 : i32, i32, i32, i32, i32
  }
}

</mosaic_0001>

<bundles_post_ra>
// kernel: tpu_custom_call.1
= control target key start
LH: loop header
LB: loop body
LE: loop exit
PB: predicated region body
PF: predicated region fallthrough
CT: control target
= control target key end

     0   :  { %6 = vsyncpa [#allocation3], 0  ;;  %s3028_s0 = inlined_call_operand.hbm [shape: f32[2,4,16,16], index: 0, kind: input, shape index: {}]   ;;  %s3029_s1 = inlined_call_operand.hbm [shape: f32[2,4,4,16,16], index: 1, kind: output, shape index: {}]  }
   0x1   :  { %8 = vsyncpa [#allocation3 + $0x1], 0 }
   0x2   :  { %9 = vsyncpa [#allocation4], 0 }
   0x3   :  { %11 = vsyncpa [#allocation4 + $0x1], 0  ;;  %s1664_s6 = smov 0   ;;  %s1666_s7 = smov 0  }
   0x4   :  { %s1668_s8 = smov 0   ;;  %s1670_s9 = smov 0  }
   0x5   :  { %s1672_s10 = smov 0   ;;  %s1674_s11 = smov 0  }
   0x6 LB: > { %s1409_s12 = sadd.s32 4294967295, %s1641_s11   ;;  %s1410_s13 = sadd.s32 4294967294, %s1641_s11   ;;  %s1641_s11 = sphi %s1674_s11, %s17_s11   ;;  %s1637_s10 = sphi %s1672_s10, %s3044_s10   ;;  %s1633_s9 = sphi %s1670_s9, %s3043_s9   ;;  %s1629_s8 = sphi %s1668_s8, %s3042_s8   ;;  %s1625_s7 = sphi %s1666_s7, %s3041_s7   ;;  %s1621_s6 = sphi %s1664_s6, %s3040_s6  }
   0x7   : > { %s29_s14 = sadd.s32 1, %s1637_s10  ;;  %s38_s15 = sadd.s32 1, %s1629_s8 }
   0x8   : > { %p31_p0 = scmp.ge.s32.totalorder %s29_s14, 2  ;;  %p45_p1 = scmp.ne.s32.totalorder %s1629_s8, %s1625_s7 }
   0x9   : > { %p46_p2 = scmp.eq.s32.totalorder %s1641_s11, 0  ;;  %p51_p3 = scmp.ne.s32.totalorder %s1625_s7, %s1621_s6 }
   0xa   : > { %s3046_s14 = smov (%p31_p0, %s29_s14), 0  ;;  %p52_p5 = scmp.eq.s32.totalorder %s1409_s12, 0 }
   0xb   : > { %p1705_p4 = por %p46_p2, %p45_p1  ;;  %s33_s17 = ssub.s32 %s1637_s10, %s3046_s14 }
   0xc   : > { %p77_p6 = scmp.eq.s32.totalorder %s1409_s12, 1  ;;  %p36_p7 = scmp.eq.s32.totalorder %s33_s17, 0 }
   0xd   : > { %p1711_p8 = por %p52_p5, %p51_p3  ;;  %p83_p10 = scmp.eq.s32.totalorder %s1410_s13, 1 }
   0xe   : > { %p1715_p9 = por %p77_p6, %p45_p1  ;;  %p1474_p13 = scmp.lt.s32.totalorder %s1641_s11, 2 }
   0xf   : > { %s1720_s20 = scalar_select %p36_p7, %s1629_s8, %s38_s15  }
  0x10   : > { %p1722_p11 = por %p83_p10, %p51_p3  ;;  %s103_s22 = sand.u32 1, %s1629_s8  }
  0x11   : > { %s1413_s23 = sshll.u32 %s103_s22, 6  ;;  %s1460_s24 = sshll.u32 %s1637_s10, 10 }
  0x12   : > { %s116_s27 = scalar_lea.hbm %s3028_s0, %s1460_s24  ;;  %s107_s28 = scalar_lea.vmem [#allocation2], %s1413_s23 }
  0x13   : > { %s117_s29 = sshll.u32 %s107_s28, 4  ;;  %p1735_p0 = pnand %p1474_p13, %p1705_p4  ;;  %s118_s29 = int_to_ptr.vmem [resolvable:$true] %s117_s29 }
  0x14   : > { %p1416_p1 = scmp.ge.s32.totalorder %s1641_s11, 1  ;;  %s104_s2 = scalar_lea.sflag [#allocation3], %s103_s22 }
  0x15   : > { %p1535_p2 = pneg %p1735_p0  ;;  %s1546_s3 = scalar_lea.vmem %s118_s29, 1024 }
  0x16   : > { %p1547_p3 = scmp.ne.s32.totalorder %s118_s29, %s1546_s3  ;;  %s1643_s4 = smov [#allocation2]  }
  0x17   : > { %s1551_s5 = sshll.u32 %s1643_s4, 4  ;;  %s1552_s5 = int_to_ptr.vmem [resolvable:$false] %s1551_s5 }
  0x18   : > { %p1549_p5 = pnand %p1547_p3, %p1535_p2  ;;  %s1553_s12 = scalar_lea.vmem %s1552_s5, 2048 }
  0x19   : > { %p1554_p7 = scmp.lt.s32.totalorder %s118_s29, %s1552_s5  ;;  %p1555_p10 = scmp.lt.s32.totalorder %s1553_s12, %s1546_s3 }
  0x1a   : > { %p1550_p6 = pneg %p1549_p5 }
  0x1b   : > { %p1556_p12 = por %p1555_p10, %p1554_p7 }
  0x1d   : > { %p1557_p4 = pnand %p1556_p12, %p1550_p6 }
  0x1f   : > { %1560 = shalt.err (!%p1557_p4)
}
  0x20   : > { %s1644_s13 = smov 128   ;;  %s1645_s15 = smov 8  }
  0x21   : > { %1469 = dma.hbm_to_vmem [thread:$0]  (!%p1735_p0), %s116_s27, 1024, %s118_s29, %s104_s2, %s1644_s13, %s1644_s13, %s1645_s15  }
  0x22   : > { %p125_p13 = scmp.lt.s32.totalorder %s1641_s11, 3 }
  0x24   : > { %p126_p2 = pnand %p1416_p1, %p125_p13 }
  0x25   : > { %s1748_s16 = sand.u32 (!%p126_p2), 1, %s1625_s7  }
  0x26   : > { %129 = sbr.rel (%p126_p2) target bundleno = 1337 (0x539), region = 24  ;;  %s1417_s17 = sshll.u32 (!%p126_p2), %s1748_s16, 6 }
  0x27   : > { %s132_s22 = scalar_lea.sflag (!%p126_p2), [#allocation3], %s1748_s16  ;;  %s1752_s23 = scalar_lea.vmem (!%p126_p2), [#allocation2], %s1417_s17 }
  0x2b   : > { %1612 = dma.done.wait (%p1711_p8), %s132_s22, 1024  }
  0x2c   : > { %1614 = vsyncadd (%p1711_p8), %s132_s22, 4294966272  ;;  %v156_v0 = vlaneseq  ;;  %s1418_s24 = sshll.u32 %s1748_s16, 8  ;;  %vm474_vm0 = vcmask 130048   ;;  %v1771_v5 = vld [vmem:[%s1752_s23 + $0x10] sm:$0xff]  ;;  %v1774_v6 = vld [vmem:[%s1752_s23 + $0x18] sm:$0xff]  ;;  %s1646_s25 = smov 16  }
  0x2d   : > { %v489_v7 = vrot.slane %v1771_v5, 6  ;;  %s1780_s18 = scalar_lea.vmem [#allocation5], %s1418_s24  ;;  %v1789_v8 = vld [vmem:[%s1752_s23] sm:$0xff]  ;;  %v1792_v9 = vld [vmem:[%s1752_s23 + $0x8] sm:$0xff]  ;;  %v490_v10 = vrot.slane %v1774_v6, 6  ;;  %v497_v11 = vrot.slane %v1771_v5, 7 }
  0x2e   : > { %v1759_v1 = vshrl.u32 %v156_v0, 7  ;;  %1427 = vst.msk [vmem:[%s1780_s18 + $0x10] sm:$0xff] %vm474_vm0, %v1771_v5  ;;  %1428 = vst.msk [vmem:[%s1780_s18 + $0x18] sm:$0xff] %vm474_vm0, %v1774_v6  ;;  %v498_v12 = vrot.slane %v1774_v6, 7  ;;  %v505_v13 = vrot.slane %v1771_v5, 1  ;;  %v1805_v14 = vld [vmem:[%s1752_s23 + $0x20] sm:$0xff] }
  0x2f   : > { %475 = vst.msk [vmem:[%s1780_s18] sm:$0xff] %vm474_vm0, %v1789_v8  ;;  %476 = vst.msk [vmem:[%s1780_s18 + $0x8] sm:$0xff] %vm474_vm0, %v1792_v9  ;;  %v1808_v15 = vld [vmem:[%s1752_s23 + $0x28] sm:$0xff]  ;;  %v506_v16 = vrot.slane %v1774_v6, 1  ;;  %v513_v17 = vrot.slane %v1771_v5, 2  ;;  %v514_v18 = vrot.slane %v1774_v6, 2 }
  0x30   : > { %v158_v2 = vadd.s32 8, %v1759_v1  ;;  %vm213_vm1 = vcmp.lt.s32.totalorder %v1759_v1, 2  ;;  %vm222_vm2 = vcmp.lt.s32.totalorder %v1759_v1, 1  ;;  %vm231_vm3 = vcmp.lt.s32.totalorder %v1759_v1, 7  ;;  %1437 = vst.msk [vmem:[%s1780_s18 + $0x20] sm:$0xff] %vm474_vm0, %v1805_v14  ;;  %1438 = vst.msk [vmem:[%s1780_s18 + $0x28] sm:$0xff] %vm474_vm0, %v1808_v15 }
  0x31   : > { %vm240_vm6 = vcmp.lt.s32.totalorder %v1759_v1, 6  ;;  %v211_v19 = vrot.slane %v1789_v8, 6  ;;  %v1821_v20 = vld [vmem:[%s1752_s23 + $0x30] sm:$0xff]  ;;  %v1824_v21 = vld [vmem:[%s1752_s23 + $0x38] sm:$0xff]  ;;  %v491_v22 = vsel %vm213_vm1, %v489_v7, %v490_v10  ;;  %v499_v23 = vsel %vm222_vm2, %v497_v11, %v498_v12  ;;  %s1647_s26 = smov 114   ;;  %s1648_s27 = smov 113  }
  0x32   : > { %v1763_v3 = vadd.s32 1, %v158_v2  ;;  %v1765_v4 = vadd.s32 2, %v158_v2  ;;  %v212_v24 = vrot.slane %v1792_v9, 6  ;;  %v220_v25 = vrot.slane %v1789_v8, 7  ;;  %1447 = vst.msk [vmem:[%s1780_s18 + $0x30] sm:$0xff] %vm474_vm0, %v1821_v20  ;;  %1448 = vst.msk [vmem:[%s1780_s18 + $0x38] sm:$0xff] %vm474_vm0, %v1824_v21 }
  0x33   : > { %v496_v26 = vmax.f32 %v1774_v6, %v491_v22  ;;  %v508_v27 = vsel %vm231_vm3, %v506_v16, %v505_v13  ;;  %v516_v28 = vsel %vm240_vm6, %v514_v18, %v513_v17  ;;  %v221_v29 = vrot.slane %v1792_v9, 7  ;;  %s1649_s28 = smov 127   ;;  %s1650_s29 = smov 126  }
  0x34   : > { %vm182_vm4 = vcmp.lt.s32.totalorder %v1763_v3, 16  ;;  %vm190_vm5 = vcmp.lt.s32.totalorder %v1765_v4, 16  ;;  %v214_v32 = vsel %vm213_vm1, %v211_v19, %v212_v24  ;;  %v229_v33 = vrot.slane %v1789_v8, 1  ;;  %s1461_s30 = sshll.u32 %s1633_s9, 12  ;;  %s1322_s2 = sshll.u32 %s1780_s18, 4  ;;  %s2978_s2 = int_to_ptr.vmem [resolvable:$true] %s1322_s2 }
  0x35   : > { %v510_v30 = vsel %vm182_vm4, %v508_v27, -inf  ;;  %v518_v31 = vsel %vm190_vm5, %v516_v28, -inf  ;;  %v504_v34 = vmax.f32 %v496_v26, %v499_v23  ;;  %v219_v35 = vmax.f32 %v1792_v9, %v214_v32  ;;  %s2976_s5 = scalar_lea.hbm %s3029_s1, %s1461_s30  ;;  %s1306_s9 = scalar_lea.sflag [#allocation4], %s1748_s16 }
  0x36   : > { %v223_v36 = vsel %vm222_vm2, %v220_v25, %v221_v29  ;;  %v230_v37 = vrot.slane %v1792_v9, 1  ;;  %v238_v38 = vrot.slane %v1789_v8, 2  ;;  %v239_v39 = vrot.slane %v1792_v9, 2  ;;  %s1561_s12 = scalar_lea.vmem %s2978_s2, 4096  ;;  %s1651_s13 = smov [#allocation5]  }
  0x37   : > { %v762_v40 = vrot.slane %v1805_v14, 6  ;;  %v763_v41 = vrot.slane %v1808_v15, 6  ;;  %v512_v42 = vmax.f32 %v504_v34, %v510_v30  ;;  %v228_v43 = vmax.f32 %v219_v35, %v223_v36  ;;  %p1562_p8 = scmp.ne.s32.totalorder %s2978_s2, %s1561_s12  ;;  %s1565_s15 = sshll.u32 %s1651_s13, 4  ;;  %s1566_s15 = int_to_ptr.vmem [resolvable:$false] %s1565_s15 }
  0x38   : > { %v233_v44 = vsel %vm231_vm3, %v230_v37, %v229_v33  ;;  %v770_v45 = vrot.slane %v1805_v14, 7  ;;  %v242_v47 = vsel %vm240_vm6, %v239_v39, %v238_v38  ;;  %v771_v49 = vrot.slane %v1808_v15, 7  ;;  %s1567_s17 = scalar_lea.vmem %s1566_s15, 8192  ;;  %p1568_p1 = scmp.lt.s32.totalorder %s2978_s2, %s1566_s15 }
  0x39   : > { %v235_v46 = vsel %vm182_vm4, %v233_v44, -inf  ;;  %v764_v48 = vsel %vm213_vm1, %v762_v40, %v763_v41  ;;  %v1889_v50 = vmax.f32 %v512_v42, %v518_v31  ;;  %v244_v52 = vsel %vm190_vm5, %v242_v47, -inf  ;;  %p1563_p12 = pnand %p1562_p8, %p1715_p9  ;;  %p1569_p3 = scmp.lt.s32.totalorder %s1567_s17, %s1561_s12 }
  0x3a   : > { %v237_v51 = vmax.f32 %v228_v43, %v235_v46  ;;  %v769_v53 = vmax.f32 %v1808_v15, %v764_v48  ;;  %v772_v54 = vsel %vm222_vm2, %v770_v45, %v771_v49  ;;  %v778_v55 = vrot.slane %v1805_v14, 1 }
  0x3b   : > { %v779_v56 = vrot.slane %v1808_v15, 1  ;;  %v786_v57 = vrot.slane %v1805_v14, 2  ;;  %524 = vrot.lane.b32.xlu1 %v1889_v50, %s1646_s25  ;;  %v787_v60 = vrot.slane %v1808_v15, 2  ;;  %v1907_v61 = vadd.s32 4294967294, %v1759_v1  ;;  %p1564_p0 = pneg %p1563_p12  ;;  %p1570_p5 = por %p1569_p3, %p1568_p1 }
  0x3c   : > { %v1903_v58 = vmax.f32 %v237_v51, %v244_v52  ;;  %v777_v59 = vmax.f32 %v769_v53, %v772_v54  ;;  %v1916_v63 = vadd.s32 4294967295, %v1759_v1  ;;  %v215_v2 = vsel %vm213_vm1, %v212_v24, %v211_v19 }
  0x3d   : > { %v781_v62 = vsel %vm231_vm3, %v779_v56, %v778_v55  ;;  %v224_v9 = vsel %vm222_vm2, %v221_v29, %v220_v25  ;;  %v789_v23 = vsel %vm240_vm6, %v787_v60, %v786_v57  ;;  %vm163_vm7 = vcmp.ge.s32.totalorder %v1907_v61, 0  ;;  %p1571_p6 = pnand %p1570_p5, %p1564_p0 }
  0x3e   : > { %251 = vrot.lane.b32.xlu0 %v1903_v58, %s1646_s25  ;;  %v783_v22 = vsel %vm182_vm4, %v781_v62, -inf  ;;  %v232_v19 = vsel %vm231_vm3, %v229_v33, %v230_v37  ;;  %v791_v25 = vsel %vm190_vm5, %v789_v23, -inf  ;;  %vm171_vm8 = vcmp.ge.s32.totalorder %v1916_v63, 0 }
  0x3f   : > { %v785_v24 = vmax.f32 %v777_v59, %v783_v22  ;;  %v216_v26 = vsel %vm163_vm7, %v215_v2, -inf  ;;  %v225_v28 = vsel %vm171_vm8, %v224_v9, -inf  ;;  %v241_v29 = vsel %vm240_vm6, %v238_v38, %v239_v39 }
  0x40   : > { %v218_v27 = vmax.f32 %v1789_v8, %v216_v26  ;;  %v492_v30 = vsel %vm213_vm1, %v490_v10, %v489_v7  ;;  %v500_v8 = vsel %vm222_vm2, %v498_v12, %v497_v11  ;;  %v507_v33 = vsel %vm231_vm3, %v505_v13, %v506_v16 }
  0x41   : > { %v1951_v31 = vmax.f32 %v785_v24, %v791_v25  ;;  %v493_v32 = vsel %vm163_vm7, %v492_v30, -inf  ;;  %v501_v34 = vsel %vm171_vm8, %v500_v8, -inf  ;;  %v515_v11 = vsel %vm240_vm6, %v513_v17, %v514_v18 }
  0x42   : > { %v227_v7 = vmax.f32 %v218_v27, %v225_v28  ;;  %v495_v10 = vmax.f32 %v1771_v5, %v493_v32  ;;  %v1035_v12 = vrot.slane %v1821_v20, 6  ;;  %v1036_v13 = vrot.slane %v1824_v21, 6 }
  0x43   : > { %797 = vrot.lane.b32.xlu1 %v1951_v31, %s1646_s25  ;;  %v1043_v16 = vrot.slane %v1821_v20, 7  ;;  %v1044_v35 = vrot.slane %v1824_v21, 7  ;;  %v1051_v6 = vrot.slane %v1821_v20, 1  ;;  %v1052_v5 = vrot.slane %v1824_v21, 1 }
  0x44   : > { %v236_v36 = vmax.f32 %v227_v7, %v232_v19  ;;  %v503_v37 = vmax.f32 %v495_v10, %v501_v34  ;;  %v1037_v17 = vsel %vm213_vm1, %v1035_v12, %v1036_v13  ;;  %v1059_v38 = vrot.slane %v1821_v20, 2 }
  0x45   : > { %v1045_v18 = vsel %vm222_vm2, %v1043_v16, %v1044_v35  ;;  %v1060_v39 = vrot.slane %v1824_v21, 2  ;;  %v1042_v44 = vmax.f32 %v1824_v21, %v1037_v17  ;;  %v1054_v46 = vsel %vm231_vm3, %v1052_v5, %v1051_v6 }
  0x46   : > { %v1990_v42 = vmax.f32 %v236_v36, %v241_v29  ;;  %v511_v43 = vmax.f32 %v503_v37, %v507_v33  ;;  %v1056_v47 = vsel %vm182_vm4, %v1054_v46, -inf  ;;  %v765_v51 = vsel %vm213_vm1, %v763_v41, %v762_v40 }
  0x47   : > { %v1062_v48 = vsel %vm240_vm6, %v1060_v39, %v1059_v38  ;;  %v773_v21 = vsel %vm222_vm2, %v771_v49, %v770_v45  ;;  %v1050_v53 = vmax.f32 %v1042_v44, %v1045_v18  ;;  %v766_v54 = vsel %vm163_vm7, %v765_v51, -inf }
  0x48   : > { %248 = vrot.lane.b32.xlu0 %v1990_v42, %s1646_s25  ;;  %v2011_v52 = vmax.f32 %v511_v43, %v515_v11  ;;  %v1064_v59 = vsel %vm190_vm5, %v1062_v48, -inf  ;;  %v768_v62 = vmax.f32 %v1805_v14, %v766_v54  ;;  %v774_v40 = vsel %vm171_vm8, %v773_v21, -inf }
  0x49   : > { %v1058_v41 = vmax.f32 %v1050_v53, %v1056_v47  ;;  %v780_v45 = vsel %vm231_vm3, %v778_v55, %v779_v56  ;;  %v1038_v49 = vsel %vm213_vm1, %v1036_v13, %v1035_v12  ;;  %v1046_v2 = vsel %vm222_vm2, %v1044_v35, %v1043_v16 }
  0x4a   : > { %521 = vrot.lane.b32.xlu1 %v2011_v52, %s1646_s25  ;;  %v776_v9 = vmax.f32 %v768_v62, %v774_v40  ;;  %v1039_v22 = vsel %vm163_vm7, %v1038_v49, -inf  ;;  %v1047_v23 = vsel %vm171_vm8, %v1046_v2, -inf  ;;  %v788_v55 = vsel %vm240_vm6, %v786_v57, %v787_v60 }
  0x4b   : > { %v2036_v19 = vmax.f32 %v1058_v41, %v1064_v59  ;;  %v1041_v56 = vmax.f32 %v1821_v20, %v1039_v22  ;;  %v1053_v25 = vsel %vm231_vm3, %v1051_v6, %v1052_v5  ;;  %v1061_v15 = vsel %vm240_vm6, %v1059_v38, %v1060_v39 }
  0x4c   : > { %v784_v24 = vmax.f32 %v776_v9, %v780_v45  ;;  %vm247_vm9 = vcmask 1047680  }
  0x4d   : > { %v1049_v26 = vmax.f32 %v1041_v56, %v1047_v23  ;;  %v160_v56 = vand.u32 127, %v156_v0 }
  0x4e   : > { %1070 = vrot.lane.b32.xlu1 %v2036_v19, %s1646_s25  ;;  %v2049_v27 = vmax.f32 %v784_v24, %v788_v55 }
  0x4f   : > { %v1057_v28 = vmax.f32 %v1049_v26, %v1053_v25  ;;  %v193_v26 = vadd.s32 4294967294, %v160_v56  ;;  %v2144_v0 = vadd.s32 1, %v160_v56 }
  0x50   : > { %794 = vrot.lane.b32.xlu0 %v2049_v27, %s1646_s25 }
  0x51   : > { %v2055_v14 = vmax.f32 %v1057_v28, %v1061_v15  ;;  %vm194_vm10 = vcmp.ge.s32.totalorder %v193_v26, 0  ;;  %vm195_vm11 = vcmp.lt.s32.totalorder %v193_v26, 16 }
  0x52   : > { %vm2140_vm12 = vmand %vm194_vm10, %vm195_vm11  ;;  %vm203_vm10 = vcmp.lt.s32.totalorder %v2144_v0, 16 }
  0x54   : > { %1067 = vrot.lane.b32.xlu0 %v2055_v14, %s1646_s25 }
  0xad   : > { %v525_v20 = vpop.permute.xlu1 %524 }
  0xae   : > { %v526_v29 = vsel %vm247_vm9, %v525_v20, %v1889_v50  ;;  %v197_v20 = vadd.s32 4294967295, %v160_v56 }
  0xb0   : > { %v252_v57 = vpop.permute.xlu0 %251  ;;  %vm198_vm13 = vcmp.ge.s32.totalorder %v197_v20, 0  ;;  %vm199_vm14 = vcmp.lt.s32.totalorder %v197_v20, 16 }
  0xb1   : > { %v253_v60 = vsel %vm247_vm9, %v252_v57, %v1903_v58  ;;  %vm2146_vm15 = vmand %vm198_vm13, %vm199_vm14 }
  0xb2   : > { %256 = vrot.lane.b32.xlu1 %v253_v60, %s1646_s25 }
  0xb5   : > { %v798_v30 = vpop.permute.xlu1 %797 }
  0xb6   : > { %529 = vrot.lane.b32.xlu1 %v526_v29, %s1646_s25  ;;  %v799_v32 = vsel %vm247_vm9, %v798_v30, %v1951_v31 }
  0xba   : > { %v249_v8 = vpop.permute.xlu0 %248  ;;  %802 = vrot.lane.b32.xlu1 %v799_v32, %s1646_s25 }
  0xbb   : > { %v250_v33 = vsel %vm247_vm9, %v249_v8, %v1990_v42 }
  0xbc   : > { %254 = vrot.lane.b32.xlu0 %v250_v33, %s1646_s25  ;;  %v522_v7 = vpop.permute.xlu1 %521 }
  0xbd   : > { %v523_v10 = vsel %vm247_vm9, %v522_v7, %v2011_v52  ;;  %v2152_v7 = vadd.s32 2, %v160_v56 }
  0xbf   : > { %vm207_vm11 = vcmp.lt.s32.totalorder %v2152_v7, 16 }
  0xc0   : > { %527 = vrot.lane.b32.xlu0 %v523_v10, %s1646_s25  ;;  %v1071_v34 = vpop.permute.xlu1 %1070 }
  0xc1   : > { %v1072_v11 = vsel %vm247_vm9, %v1071_v34, %v2036_v19 }
  0xc2   : > { %1075 = vrot.lane.b32.xlu1 %v1072_v11, %s1646_s25  ;;  %v795_v12 = vpop.permute.xlu0 %794 }
  0xc3   : > { %v796_v13 = vsel %vm247_vm9, %v795_v12, %v2049_v27 }
  0xc4   : > { %800 = vrot.lane.b32.xlu0 %v796_v13, %s1646_s25 }
  0xc6   : > { %v1068_v16 = vpop.permute.xlu0 %1067 }
  0xc7   : > { %v1069_v35 = vsel %vm247_vm9, %v1068_v16, %v2055_v14 }
  0xc8   : > { %1073 = vrot.lane.b32.xlu0 %v1069_v35, %s1646_s25 }
 0x124   : > { %v257_v36 = vpop.permute.xlu1 %256 }
 0x125   : > { %v259_v37 = vsel %vm247_vm9, %v257_v36, %v1903_v58 }
 0x126   : > { %264 = vrot.lane.b32.xlu1 %v259_v37, %s1647_s26 }
 0x128   : > { %v530_v6 = vpop.permute.xlu1 %529 }
 0x129   : > { %v532_v5 = vsel %vm247_vm9, %v530_v6, %v1889_v50 }
 0x12a   : > { %537 = vrot.lane.b32.xlu1 %v532_v5, %s1647_s26 }
 0x12c   : > { %v803_v17 = vpop.permute.xlu1 %802 }
 0x12d   : > { %v805_v18 = vsel %vm247_vm9, %v803_v17, %v1951_v31 }
 0x12e   : > { %v255_v38 = vpop.permute.xlu0 %254  ;;  %810 = vrot.lane.b32.xlu1 %v805_v18, %s1647_s26 }
 0x12f   : > { %v258_v39 = vsel %vm247_vm9, %v255_v38, %v1990_v42 }
 0x130   : > { %262 = vrot.lane.b32.xlu0 %v258_v39, %s1647_s26 }
 0x132   : > { %v528_v43 = vpop.permute.xlu0 %527 }
 0x133   : > { %v531_v44 = vsel %vm247_vm9, %v528_v43, %v2011_v52 }
 0x134   : > { %535 = vrot.lane.b32.xlu0 %v531_v44, %s1647_s26  ;;  %v1076_v46 = vpop.permute.xlu1 %1075 }
 0x135   : > { %v1078_v47 = vsel %vm247_vm9, %v1076_v46, %v2036_v19 }
 0x136   : > { %1083 = vrot.lane.b32.xlu1 %v1078_v47, %s1647_s26  ;;  %v801_v48 = vpop.permute.xlu0 %800 }
 0x137   : > { %v804_v51 = vsel %vm247_vm9, %v801_v48, %v2049_v27 }
 0x138   : > { %808 = vrot.lane.b32.xlu0 %v804_v51, %s1647_s26 }
 0x13a   : > { %274 = vrot.lane.b32.xlu1 %v259_v37, %s1648_s27  ;;  %v1074_v21 = vpop.permute.xlu0 %1073 }
 0x13b   : > { %v1077_v53 = vsel %vm247_vm9, %v1074_v21, %v2055_v14 }
 0x13c   : > { %1081 = vrot.lane.b32.xlu0 %v1077_v53, %s1647_s26 }
 0x13e   : > { %547 = vrot.lane.b32.xlu1 %v532_v5, %s1648_s27 }
 0x140   : > { %272 = vrot.lane.b32.xlu0 %v258_v39, %s1648_s27 }
 0x142   : > { %820 = vrot.lane.b32.xlu1 %v805_v18, %s1648_s27 }
 0x144   : > { %545 = vrot.lane.b32.xlu0 %v531_v44, %s1648_s27 }
 0x146   : > { %1093 = vrot.lane.b32.xlu1 %v1078_v47, %s1648_s27 }
 0x148   : > { %818 = vrot.lane.b32.xlu0 %v804_v51, %s1648_s27 }
 0x14a   : > { %284 = vrot.lane.b32.xlu1 %v259_v37, %s1649_s28 }
 0x14c   : > { %1091 = vrot.lane.b32.xlu0 %v1077_v53, %s1648_s27 }
 0x14e   : > { %557 = vrot.lane.b32.xlu1 %v532_v5, %s1649_s28 }
 0x150   : > { %282 = vrot.lane.b32.xlu0 %v258_v39, %s1649_s28 }
 0x152   : > { %830 = vrot.lane.b32.xlu1 %v805_v18, %s1649_s28 }
 0x154   : > { %555 = vrot.lane.b32.xlu0 %v531_v44, %s1649_s28 }
 0x156   : > { %1103 = vrot.lane.b32.xlu1 %v1078_v47, %s1649_s28 }
 0x158   : > { %828 = vrot.lane.b32.xlu0 %v804_v51, %s1649_s28 }
 0x15a   : > { %294 = vrot.lane.b32.xlu1 %v259_v37, %s1650_s29 }
 0x15c   : > { %1101 = vrot.lane.b32.xlu0 %v1077_v53, %s1649_s28 }
 0x15e   : > { %567 = vrot.lane.b32.xlu1 %v532_v5, %s1650_s29 }
 0x160   : > { %292 = vrot.lane.b32.xlu0 %v258_v39, %s1650_s29 }
 0x162   : > { %840 = vrot.lane.b32.xlu1 %v805_v18, %s1650_s29 }
 0x164   : > { %565 = vrot.lane.b32.xlu0 %v531_v44, %s1650_s29 }
 0x166   : > { %1113 = vrot.lane.b32.xlu1 %v1078_v47, %s1650_s29 }
 0x168   : > { %838 = vrot.lane.b32.xlu0 %v804_v51, %s1650_s29 }
 0x16c   : > { %1111 = vrot.lane.b32.xlu0 %v1077_v53, %s1650_s29 }
 0x198   : > { %v265_v54 = vpop.permute.xlu1 %264 }
 0x199   : > { %v269_v8 = vsel %vm2140_vm12, %v265_v54, -inf }
 0x19a   : > { %v271_v34 = vmax.f32 %v1903_v58, %v269_v8 }
 0x19c   : > { %v538_v59 = vpop.permute.xlu1 %537 }
 0x19d   : > { %v542_v10 = vsel %vm2140_vm12, %v538_v59, -inf }
 0x19e   : > { %v544_v58 = vmax.f32 %v1889_v50, %v542_v10 }
 0x1a0   : > { %v811_v40 = vpop.permute.xlu1 %810 }
 0x1a1   : > { %v815_v16 = vsel %vm2140_vm12, %v811_v40, -inf }
 0x1a2   : > { %v263_v62 = vpop.permute.xlu0 %262  ;;  %v817_v50 = vmax.f32 %v1951_v31, %v815_v16 }
 0x1a3   : > { %v268_v13 = vsel %vm2140_vm12, %v263_v62, -inf }
 0x1a4   : > { %v270_v43 = vmax.f32 %v1990_v42, %v268_v13 }
 0x1a6   : > { %v536_v41 = vpop.permute.xlu0 %535 }
 0x1a7   : > { %v541_v35 = vsel %vm2140_vm12, %v536_v41, -inf }
 0x1a8   : > { %v1084_v45 = vpop.permute.xlu1 %1083  ;;  %v543_v44 = vmax.f32 %v2011_v52, %v541_v35 }
 0x1a9   : > { %v1088_v36 = vsel %vm2140_vm12, %v1084_v45, -inf }
 0x1aa   : > { %v809_v49 = vpop.permute.xlu0 %808  ;;  %v1090_v46 = vmax.f32 %v2036_v19, %v1088_v36 }
 0x1ab   : > { %v814_v6 = vsel %vm2140_vm12, %v809_v49, -inf }
 0x1ac   : > { %v275_v2 = vpop.permute.xlu1 %274  ;;  %v816_v48 = vmax.f32 %v2049_v27, %v814_v6 }
 0x1ad   : > { %v279_v11 = vsel %vm2146_vm15, %v275_v2, -inf }
 0x1ae   : > { %v1082_v9 = vpop.permute.xlu0 %1081  ;;  %v281_v17 = vmax.f32 %v271_v34, %v279_v11 }
 0x1af   : > { %v1087_v18 = vsel %vm2140_vm12, %v1082_v9, -inf }
 0x1b0   : > { %v548_v22 = vpop.permute.xlu1 %547  ;;  %v1089_v59 = vmax.f32 %v2055_v14, %v1087_v18 }
 0x1b1   : > { %v552_v38 = vsel %vm2146_vm15, %v548_v22, -inf }
 0x1b2   : > { %v273_v23 = vpop.permute.xlu0 %272  ;;  %v554_v42 = vmax.f32 %v544_v58, %v552_v38 }
 0x1b3   : > { %v278_v39 = vsel %vm2146_vm15, %v273_v23, -inf }
 0x1b4   : > { %v821_v55 = vpop.permute.xlu1 %820  ;;  %v280_v31 = vmax.f32 %v270_v43, %v278_v39 }
 0x1b5   : > { %v825_v51 = vsel %vm2146_vm15, %v821_v55, -inf }
 0x1b6   : > { %v2132_v24 = vpop.permute.xlu0 %545  ;;  %v827_v14 = vmax.f32 %v817_v50, %v825_v51 }
 0x1b7   : > { %v551_v19 = vsel %vm2146_vm15, %v2132_v24, -inf }
 0x1b8   : > { %v2134_v25 = vpop.permute.xlu1 %1093  ;;  %v553_v24 = vmax.f32 %v543_v44, %v551_v19 }
 0x1b9   : > { %v1098_v27 = vsel %vm2146_vm15, %v2134_v25, -inf }
 0x1ba   : > { %v2136_v15 = vpop.permute.xlu0 %818  ;;  %v1100_v25 = vmax.f32 %v1090_v46, %v1098_v27 }
 0x1bb   : > { %v824_v62 = vsel %vm2146_vm15, %v2136_v15, -inf }
 0x1bc   : > { %v285_v28 = vpop.permute.xlu1 %284  ;;  %v826_v26 = vmax.f32 %v816_v48, %v824_v62 }
 0x1bd   : > { %v289_v5 = vsel %vm203_vm10, %v285_v28, -inf }
 0x1be   : > { %v2138_v57 = vpop.permute.xlu0 %1091  ;;  %v291_v21 = vmax.f32 %v281_v17, %v289_v5 }
 0x1bf   : > { %v1097_v41 = vsel %vm2146_vm15, %v2138_v57, -inf }
 0x1c0   : > { %v558_v60 = vpop.permute.xlu1 %557  ;;  %v2221_v28 = vmax.f32 %v1089_v59, %v1097_v41 }
 0x1c1   : > { %v562_v53 = vsel %vm203_vm10, %v558_v60, -inf }
 0x1c2   : > { %v283_v30 = vpop.permute.xlu0 %282  ;;  %v564_v45 = vmax.f32 %v554_v42, %v562_v53 }
 0x1c3   : > { %v288_v49 = vsel %vm203_vm10, %v283_v30, -inf }
 0x1c4   : > { %v831_v33 = vpop.permute.xlu1 %830  ;;  %v290_v20 = vmax.f32 %v280_v31, %v288_v49 }
 0x1c5   : > { %v835_v9 = vsel %vm203_vm10, %v831_v33, -inf }
 0x1c6   : > { %v556_v12 = vpop.permute.xlu0 %555  ;;  %v837_v30 = vmax.f32 %v827_v14, %v835_v9 }
 0x1c7   : > { %v561_v22 = vsel %vm203_vm10, %v556_v12, -inf }
 0x1c8   : > { %v1104_v37 = vpop.permute.xlu1 %1103  ;;  %v563_v8 = vmax.f32 %v553_v24, %v561_v22 }
 0x1c9   : > { %v1108_v23 = vsel %vm203_vm10, %v1104_v37, -inf }
 0x1ca   : > { %v829_v47 = vpop.permute.xlu0 %828  ;;  %v1110_v33 = vmax.f32 %v1100_v25, %v1108_v23 }
 0x1cb   : > { %v834_v55 = vsel %vm203_vm10, %v829_v47, -inf }
 0x1cc   : > { %v295_v54 = vpop.permute.xlu1 %294  ;;  %v836_v10 = vmax.f32 %v826_v26, %v834_v55 }
 0x1cd   : > { %v299_v52 = vsel %vm207_vm11, %v295_v54, -inf }
 0x1ce   : > { %v2201_v40 = vmax.f32 %v291_v21, %v299_v52  ;;  %v1102_v2 = vpop.permute.xlu0 %1101 }
 0x1cf   : > { %v2225_v57 = vsel %vm203_vm10, %v1102_v2, -inf }
 0x1d0   : > { %1420 = vst.msk [vmem:[%s1780_s18 + $0x48] sm:$0xff] %vm474_vm0, %v2201_v40  ;;  %v568_v56 = vpop.permute.xlu1 %567  ;;  %v303_v13 = vrot.slane %v2201_v40, 6  ;;  %v311_v16 = vrot.slane %v2201_v40, 7  ;;  %v319_v35 = vrot.slane %v2201_v40, 1  ;;  %v1109_v36 = vmax.f32 %v2221_v28, %v2225_v57 }
 0x1d1   : > { %v572_v15 = vsel %vm207_vm11, %v568_v56, -inf  ;;  %v327_v6 = vrot.slane %v2201_v40, 2 }
 0x1d2   : > { %v2227_v60 = vmax.f32 %v564_v45, %v572_v15  ;;  %v293_v34 = vpop.permute.xlu0 %292 }
 0x1d3   : > { %v298_v11 = vsel %vm207_vm11, %v293_v34, -inf }
 0x1d4   : > { %1430 = vst.msk [vmem:[%s1780_s18 + $0x58] sm:$0xff] %vm474_vm0, %v2227_v60  ;;  %v841_v12 = vpop.permute.xlu1 %840  ;;  %v300_v37 = vmax.f32 %v290_v20, %v298_v11  ;;  %v576_v17 = vrot.slane %v2227_v60, 6  ;;  %v584_v18 = vrot.slane %v2227_v60, 7  ;;  %v592_v38 = vrot.slane %v2227_v60, 1 }
 0x1d5   : > { %v845_v58 = vsel %vm207_vm11, %v841_v12, -inf  ;;  %v600_v51 = vrot.slane %v2227_v60, 2 }
 0x1d6   : > { %v2242_v5 = vmax.f32 %v837_v30, %v845_v58  ;;  %1419 = vst.msk [vmem:[%s1780_s18 + $0x40] sm:$0xff] %vm474_vm0, %v300_v37  ;;  %v566_v39 = vpop.permute.xlu0 %565  ;;  %v302_v43 = vrot.slane %v300_v37, 6  ;;  %v310_v50 = vrot.slane %v300_v37, 7  ;;  %v318_v44 = vrot.slane %v300_v37, 1 }
 0x1d7   : > { %v326_v46 = vrot.slane %v300_v37, 2  ;;  %v571_v47 = vsel %vm207_vm11, %v566_v39, -inf }
 0x1d8   : > { %1440 = vst.msk [vmem:[%s1780_s18 + $0x68] sm:$0xff] %vm474_vm0, %v2242_v5  ;;  %v1114_v48 = vpop.permute.xlu1 %1113  ;;  %v849_v21 = vrot.slane %v2242_v5, 6  ;;  %v857_v53 = vrot.slane %v2242_v5, 7  ;;  %v2257_v54 = vmax.f32 %v563_v8, %v571_v47  ;;  %v304_v42 = vsel %vm213_vm1, %v302_v43, %v303_v13 }
 0x1d9   : > { %v1118_v59 = vsel %vm207_vm11, %v1114_v48, -inf  ;;  %v865_v31 = vrot.slane %v2242_v5, 1  ;;  %v309_v19 = vmax.f32 %v2201_v40, %v304_v42  ;;  %v321_v27 = vsel %vm231_vm3, %v319_v35, %v318_v44 }
 0x1da   : > { %v2264_v52 = vmax.f32 %v1110_v33, %v1118_v59  ;;  %v329_v62 = vsel %vm240_vm6, %v327_v6, %v326_v46  ;;  %1429 = vst.msk [vmem:[%s1780_s18 + $0x50] sm:$0xff] %vm474_vm0, %v2257_v54  ;;  %v839_v14 = vpop.permute.xlu0 %838  ;;  %v312_v41 = vsel %vm222_vm2, %v310_v50, %v311_v16  ;;  %v323_v45 = vsel %vm182_vm4, %v321_v27, -inf }
 0x1db   : > { %v305_v40 = vsel %vm213_vm1, %v303_v13, %v302_v43  ;;  %v313_v49 = vsel %vm222_vm2, %v311_v16, %v310_v50  ;;  %v844_v2 = vsel %vm207_vm11, %v839_v14, -inf  ;;  %v317_v9 = vmax.f32 %v309_v19, %v312_v41 }
 0x1dc   : > { %1450 = vst.msk [vmem:[%s1780_s18 + $0x78] sm:$0xff] %vm474_vm0, %v2264_v52  ;;  %v331_v22 = vsel %vm190_vm5, %v329_v62, -inf  ;;  %v306_v23 = vsel %vm163_vm7, %v305_v40, -inf  ;;  %v2291_v55 = vmax.f32 %v836_v10, %v844_v2  ;;  %v314_v24 = vsel %vm171_vm8, %v313_v49, -inf }
 0x1dd   : > { %v308_v56 = vmax.f32 %v300_v37, %v306_v23  ;;  %v320_v25 = vsel %vm231_vm3, %v318_v44, %v319_v35  ;;  %v325_v26 = vmax.f32 %v317_v9, %v323_v45  ;;  %v575_v15 = vrot.slane %v2257_v54, 6 }
 0x1de   : > { %v583_v28 = vrot.slane %v2257_v54, 7  ;;  %v591_v20 = vrot.slane %v2257_v54, 1  ;;  %1439 = vst.msk [vmem:[%s1780_s18 + $0x60] sm:$0xff] %vm474_vm0, %v2291_v55  ;;  %v1112_v57 = vpop.permute.xlu0 %1111  ;;  %v328_v8 = vsel %vm240_vm6, %v326_v46, %v327_v6  ;;  %v599_v33 = vrot.slane %v2257_v54, 2 }
 0x1df   : > { %v316_v30 = vmax.f32 %v308_v56, %v314_v24  ;;  %v848_v10 = vrot.slane %v2291_v55, 6  ;;  %v1117_v34 = vsel %vm207_vm11, %v1112_v57, -inf  ;;  %v2309_v11 = vmax.f32 %v325_v26, %v331_v22 }
 0x1e0   : > { %v577_v12 = vsel %vm213_vm1, %v575_v15, %v576_v17  ;;  %v856_v13 = vrot.slane %v2291_v55, 7  ;;  %v2314_v16 = vmax.f32 %v1109_v36, %v1117_v34  ;;  %v594_v58 = vsel %vm231_vm3, %v592_v38, %v591_v20 }
 0x1e1   : > { %v324_v35 = vmax.f32 %v316_v30, %v320_v25  ;;  %v582_v37 = vmax.f32 %v2227_v60, %v577_v12  ;;  %337 = vrot.lane.b32.xlu1 %v2309_v11, %s1646_s25  ;;  %v585_v6 = vsel %vm222_vm2, %v583_v28, %v584_v18  ;;  %v602_v36 = vsel %vm240_vm6, %v600_v51, %v599_v33 }
 0x1e2   : > { %v578_v39 = vsel %vm213_vm1, %v576_v17, %v575_v15  ;;  %v586_v43 = vsel %vm222_vm2, %v584_v18, %v583_v28  ;;  %1449 = vst.msk [vmem:[%s1780_s18 + $0x70] sm:$0xff] %vm474_vm0, %v2314_v16  ;;  %v596_v46 = vsel %vm182_vm4, %v594_v58, -inf  ;;  %v604_v48 = vsel %vm190_vm5, %v602_v36, -inf }
 0x1e3   : > { %v2336_v50 = vmax.f32 %v324_v35, %v328_v8  ;;  %v590_v44 = vmax.f32 %v582_v37, %v585_v6  ;;  %v579_v47 = vsel %vm163_vm7, %v578_v39, -inf  ;;  %v587_v18 = vsel %vm171_vm8, %v586_v43, -inf }
 0x1e4   : > { %v581_v17 = vmax.f32 %v2257_v54, %v579_v47  ;;  %v593_v59 = vsel %vm231_vm3, %v591_v20, %v592_v38  ;;  %v850_v19 = vsel %vm213_vm1, %v848_v10, %v849_v21  ;;  %v858_v54 = vsel %vm222_vm2, %v856_v13, %v857_v53 }
 0x1e5   : > { %334 = vrot.lane.b32.xlu0 %v2336_v50, %s1646_s25  ;;  %v598_v42 = vmax.f32 %v590_v44, %v596_v46  ;;  %v864_v27 = vrot.slane %v2291_v55, 1  ;;  %v855_v14 = vmax.f32 %v2242_v5, %v850_v19  ;;  %v872_v38 = vrot.slane %v2291_v55, 2 }
 0x1e6   : > { %v589_v62 = vmax.f32 %v581_v17, %v587_v18  ;;  %v873_v41 = vrot.slane %v2242_v5, 2  ;;  %v851_v49 = vsel %vm213_vm1, %v849_v21, %v848_v10  ;;  %v859_v2 = vsel %vm222_vm2, %v857_v53, %v856_v13 }
 0x1e7   : > { %v2365_v45 = vmax.f32 %v598_v42, %v604_v48  ;;  %v867_v40 = vsel %vm231_vm3, %v865_v31, %v864_v27  ;;  %v863_v22 = vmax.f32 %v855_v14, %v858_v54  ;;  %v601_v56 = vsel %vm240_vm6, %v599_v33, %v600_v51 }
 0x1e8   : > { %v597_v9 = vmax.f32 %v589_v62, %v593_v59  ;;  %v875_v23 = vsel %vm240_vm6, %v873_v41, %v872_v38  ;;  %v869_v21 = vsel %vm182_vm4, %v867_v40, -inf  ;;  %v852_v53 = vsel %vm163_vm7, %v851_v49, -inf }
 0x1e9   : > { %610 = vrot.lane.b32.xlu1 %v2365_v45, %s1646_s25  ;;  %v877_v24 = vsel %vm190_vm5, %v875_v23, -inf  ;;  %v871_v26 = vmax.f32 %v863_v22, %v869_v21  ;;  %v854_v15 = vmax.f32 %v2291_v55, %v852_v53  ;;  %v860_v60 = vsel %vm171_vm8, %v859_v2, -inf }
 0x1ea   : > { %v2393_v25 = vmax.f32 %v597_v9, %v601_v56  ;;  %v866_v51 = vsel %vm231_vm3, %v864_v27, %v865_v31  ;;  %v1121_v28 = vrot.slane %v2314_v16, 6  ;;  %v1122_v20 = vrot.slane %v2264_v52, 6 }
 0x1eb   : > { %v1129_v57 = vrot.slane %v2314_v16, 7  ;;  %v2407_v30 = vmax.f32 %v871_v26, %v877_v24  ;;  %v862_v55 = vmax.f32 %v854_v15, %v860_v60  ;;  %v1137_v8 = vrot.slane %v2314_v16, 1 }
 0x1ec   : > { %607 = vrot.lane.b32.xlu0 %v2393_v25, %s1646_s25  ;;  %v1138_v33 = vrot.slane %v2264_v52, 1  ;;  %v1123_v5 = vsel %vm213_vm1, %v1121_v28, %v1122_v20  ;;  %v1130_v31 = vrot.slane %v2264_v52, 7  ;;  %v1145_v10 = vrot.slane %v2314_v16, 2 }
 0x1ed   : > { %v1146_v34 = vrot.slane %v2264_v52, 2  ;;  %883 = vrot.lane.b32.xlu1 %v2407_v30, %s1646_s25  ;;  %v870_v12 = vmax.f32 %v862_v55, %v866_v51  ;;  %v1128_v13 = vmax.f32 %v2264_v52, %v1123_v5  ;;  %v1124_v37 = vsel %vm213_vm1, %v1122_v20, %v1121_v28 }
 0x1ee   : > { %v1140_v35 = vsel %vm231_vm3, %v1138_v33, %v1137_v8  ;;  %v874_v58 = vsel %vm240_vm6, %v872_v38, %v873_v41  ;;  %v1131_v6 = vsel %vm222_vm2, %v1129_v57, %v1130_v31  ;;  %v1125_v36 = vsel %vm163_vm7, %v1124_v37, -inf }
 0x1ef   : > { %v1132_v39 = vsel %vm222_vm2, %v1130_v31, %v1129_v57  ;;  %v2431_v43 = vmax.f32 %v870_v12, %v874_v58  ;;  %v1136_v52 = vmax.f32 %v1128_v13, %v1131_v6  ;;  %v1148_v44 = vsel %vm240_vm6, %v1146_v34, %v1145_v10 }
 0x1f0   : > { %v1127_v46 = vmax.f32 %v2314_v16, %v1125_v36  ;;  %v1142_v47 = vsel %vm182_vm4, %v1140_v35, -inf  ;;  %v1133_v48 = vsel %vm171_vm8, %v1132_v39, -inf  ;;  %v1150_v59 = vsel %vm190_vm5, %v1148_v44, -inf }
 0x1f1   : > { %880 = vrot.lane.b32.xlu0 %v2431_v43, %s1646_s25  ;;  %v1144_v17 = vmax.f32 %v1136_v52, %v1142_v47  ;;  %v1139_v42 = vsel %vm231_vm3, %v1137_v8, %v1138_v33  ;;  %v1147_v54 = vsel %vm240_vm6, %v1145_v10, %v1146_v34 }
 0x1f2   : > { %v1135_v18 = vmax.f32 %v1127_v46, %v1133_v48 }
 0x1f3   : > { %v2446_v19 = vmax.f32 %v1144_v17, %v1150_v59 }
 0x1f4   : > { %v1143_v16 = vmax.f32 %v1135_v18, %v1139_v42 }
 0x1f5   : > { %1156 = vrot.lane.b32.xlu1 %v2446_v19, %s1646_s25 }
 0x1f6   : > { %v2452_v27 = vmax.f32 %v1143_v16, %v1147_v54 }
 0x1f8   : > { %1153 = vrot.lane.b32.xlu0 %v2452_v27, %s1646_s25 }
 0x253   : > { %v338_v62 = vpop.permute.xlu1 %337 }
 0x254   : > { %v339_v14 = vsel %vm247_vm9, %v338_v62, %v2309_v11 }
 0x255   : > { %342 = vrot.lane.b32.xlu1 %v339_v14, %s1646_s25 }
 0x257   : > { %v335_v38 = vpop.permute.xlu0 %334 }
 0x258   : > { %v336_v41 = vsel %vm247_vm9, %v335_v38, %v2336_v50 }
 0x259   : > { %340 = vrot.lane.b32.xlu0 %v336_v41, %s1646_s25 }
 0x25b   : > { %v611_v40 = vpop.permute.xlu1 %610 }
 0x25c   : > { %v612_v49 = vsel %vm247_vm9, %v611_v40, %v2365_v45 }
 0x25d   : > { %615 = vrot.lane.b32.xlu1 %v612_v49, %s1646_s25 }
 0x25e   : > { %v608_v2 = vpop.permute.xlu0 %607 }
 0x25f   : > { %v609_v9 = vsel %vm247_vm9, %v608_v2, %v2393_v25  ;;  %v884_v22 = vpop.permute.xlu1 %883 }
 0x260   : > { %613 = vrot.lane.b32.xlu0 %v609_v9, %s1646_s25  ;;  %v885_v23 = vsel %vm247_vm9, %v884_v22, %v2407_v30 }
 0x261   : > { %888 = vrot.lane.b32.xlu1 %v885_v23, %s1646_s25 }
 0x263   : > { %v881_v56 = vpop.permute.xlu0 %880 }
 0x264   : > { %v882_v21 = vsel %vm247_vm9, %v881_v56, %v2431_v43 }
 0x265   : > { %886 = vrot.lane.b32.xlu0 %v882_v21, %s1646_s25 }
 0x267   : > { %v1157_v24 = vpop.permute.xlu1 %1156 }
 0x268   : > { %v1158_v53 = vsel %vm247_vm9, %v1157_v24, %v2446_v19 }
 0x269   : > { %1161 = vrot.lane.b32.xlu1 %v1158_v53, %s1646_s25 }
 0x26a   : > { %v1154_v26 = vpop.permute.xlu0 %1153 }
 0x26b   : > { %v1155_v15 = vsel %vm247_vm9, %v1154_v26, %v2452_v27 }
 0x26c   : > { %1159 = vrot.lane.b32.xlu0 %v1155_v15, %s1646_s25 }
 0x2c7   : > { %v343_v60 = vpop.permute.xlu1 %342 }
 0x2c8   : > { %v345_v51 = vsel %vm247_vm9, %v343_v60, %v2309_v11 }
 0x2c9   : > { %350 = vrot.lane.b32.xlu1 %v345_v51, %s1647_s26 }
 0x2cb   : > { %v341_v28 = vpop.permute.xlu0 %340 }
 0x2cc   : > { %v344_v20 = vsel %vm247_vm9, %v341_v28, %v2336_v50 }
 0x2cd   : > { %348 = vrot.lane.b32.xlu0 %v344_v20, %s1647_s26 }
 0x2cf   : > { %v616_v57 = vpop.permute.xlu1 %615 }
 0x2d0   : > { %v618_v55 = vsel %vm247_vm9, %v616_v57, %v2365_v45 }
 0x2d1   : > { %623 = vrot.lane.b32.xlu1 %v618_v55, %s1647_s26 }
 0x2d2   : > { %v614_v8 = vpop.permute.xlu0 %613 }
 0x2d3   : > { %v617_v33 = vsel %vm247_vm9, %v614_v8, %v2393_v25  ;;  %v889_v5 = vpop.permute.xlu1 %888 }
 0x2d4   : > { %621 = vrot.lane.b32.xlu0 %v617_v33, %s1647_s26  ;;  %v891_v31 = vsel %vm247_vm9, %v889_v5, %v2407_v30 }
 0x2d5   : > { %896 = vrot.lane.b32.xlu1 %v891_v31, %s1647_s26 }
 0x2d7   : > { %v887_v10 = vpop.permute.xlu0 %886 }
 0x2d8   : > { %v890_v34 = vsel %vm247_vm9, %v887_v10, %v2431_v43 }
 0x2d9   : > { %894 = vrot.lane.b32.xlu0 %v890_v34, %s1647_s26 }
 0x2db   : > { %v1162_v12 = vpop.permute.xlu1 %1161 }
 0x2dc   : > { %v1164_v13 = vsel %vm247_vm9, %v1162_v12, %v2446_v19 }
 0x2dd   : > { %1169 = vrot.lane.b32.xlu1 %v1164_v13, %s1647_s26 }
 0x2de   : > { %v1160_v35 = vpop.permute.xlu0 %1159 }
 0x2df   : > { %v1163_v37 = vsel %vm247_vm9, %v1160_v35, %v2452_v27 }
 0x2e0   : > { %1167 = vrot.lane.b32.xlu0 %v1163_v37, %s1647_s26 }
 0x2e1   : > { %360 = vrot.lane.b32.xlu1 %v345_v51, %s1648_s27 }
 0x2e4   : > { %358 = vrot.lane.b32.xlu0 %v344_v20, %s1648_s27 }
 0x2e5   : > { %633 = vrot.lane.b32.xlu1 %v618_v55, %s1648_s27 }
 0x2e8   : > { %631 = vrot.lane.b32.xlu0 %v617_v33, %s1648_s27 }
 0x2e9   : > { %906 = vrot.lane.b32.xlu1 %v891_v31, %s1648_s27 }
 0x2ec   : > { %904 = vrot.lane.b32.xlu0 %v890_v34, %s1648_s27 }
 0x2ed   : > { %1179 = vrot.lane.b32.xlu1 %v1164_v13, %s1648_s27 }
 0x2f0   : > { %1177 = vrot.lane.b32.xlu0 %v1163_v37, %s1648_s27 }
 0x2f1   : > { %370 = vrot.lane.b32.xlu1 %v345_v51, %s1649_s28 }
 0x2f4   : > { %368 = vrot.lane.b32.xlu0 %v344_v20, %s1649_s28 }
 0x2f5   : > { %643 = vrot.lane.b32.xlu1 %v618_v55, %s1649_s28 }
 0x2f8   : > { %641 = vrot.lane.b32.xlu0 %v617_v33, %s1649_s28 }
 0x2f9   : > { %916 = vrot.lane.b32.xlu1 %v891_v31, %s1649_s28 }
 0x2fc   : > { %914 = vrot.lane.b32.xlu0 %v890_v34, %s1649_s28 }
 0x2fd   : > { %1189 = vrot.lane.b32.xlu1 %v1164_v13, %s1649_s28 }
 0x300   : > { %1187 = vrot.lane.b32.xlu0 %v1163_v37, %s1649_s28 }
 0x301   : > { %380 = vrot.lane.b32.xlu1 %v345_v51, %s1650_s29 }
 0x304   : > { %378 = vrot.lane.b32.xlu0 %v344_v20, %s1650_s29 }
 0x305   : > { %653 = vrot.lane.b32.xlu1 %v618_v55, %s1650_s29 }
 0x308   : > { %651 = vrot.lane.b32.xlu0 %v617_v33, %s1650_s29 }
 0x309   : > { %926 = vrot.lane.b32.xlu1 %v891_v31, %s1650_s29 }
 0x30c   : > { %924 = vrot.lane.b32.xlu0 %v890_v34, %s1650_s29 }
 0x30d   : > { %1199 = vrot.lane.b32.xlu1 %v1164_v13, %s1650_s29 }
 0x310   : > { %1197 = vrot.lane.b32.xlu0 %v1163_v37, %s1650_s29 }
 0x33b   : > { %v351_v58 = vpop.permute.xlu1 %350 }
 0x33c   : > { %v355_v49 = vsel %vm2140_vm12, %v351_v58, -inf }
 0x33d   : > { %v357_v53 = vmax.f32 %v2309_v11, %v355_v49 }
 0x33f   : > { %v349_v6 = vpop.permute.xlu0 %348 }
 0x340   : > { %v354_v2 = vsel %vm2140_vm12, %v349_v6, -inf }
 0x341   : > { %v356_v26 = vmax.f32 %v2336_v50, %v354_v2 }
 0x343   : > { %v624_v36 = vpop.permute.xlu1 %623 }
 0x344   : > { %v628_v9 = vsel %vm2140_vm12, %v624_v36, -inf }
 0x345   : > { %v630_v15 = vmax.f32 %v2365_v45, %v628_v9 }
 0x346   : > { %v622_v39 = vpop.permute.xlu0 %621 }
 0x347   : > { %v897_v52 = vpop.permute.xlu1 %896  ;;  %v627_v22 = vsel %vm2140_vm12, %v622_v39, -inf }
 0x348   : > { %v901_v23 = vsel %vm2140_vm12, %v897_v52, -inf  ;;  %v629_v28 = vmax.f32 %v2393_v25, %v627_v22 }
 0x349   : > { %v903_v20 = vmax.f32 %v2407_v30, %v901_v23 }
 0x34b   : > { %v895_v44 = vpop.permute.xlu0 %894 }
 0x34c   : > { %v900_v56 = vsel %vm2140_vm12, %v895_v44, -inf }
 0x34d   : > { %v902_v57 = vmax.f32 %v2431_v43, %v900_v56 }
 0x34f   : > { %v1170_v46 = vpop.permute.xlu1 %1169 }
 0x350   : > { %v1174_v24 = vsel %vm2140_vm12, %v1170_v46, -inf }
 0x351   : > { %v1176_v8 = vmax.f32 %v2446_v19, %v1174_v24 }
 0x352   : > { %v1168_v47 = vpop.permute.xlu0 %1167 }
 0x353   : > { %v361_v48 = vpop.permute.xlu1 %360  ;;  %v1173_v60 = vsel %vm2140_vm12, %v1168_v47, -inf }
 0x354   : > { %v365_v55 = vsel %vm2146_vm15, %v361_v48, -inf  ;;  %v1175_v25 = vmax.f32 %v2452_v27, %v1173_v60 }
 0x355   : > { %v367_v5 = vmax.f32 %v357_v53, %v365_v55 }
 0x356   : > { %v359_v17 = vpop.permute.xlu0 %358 }
 0x357   : > { %v634_v18 = vpop.permute.xlu1 %633  ;;  %v364_v11 = vsel %vm2146_vm15, %v359_v17, -inf }
 0x358   : > { %v638_v50 = vsel %vm2146_vm15, %v634_v18, -inf  ;;  %v366_v12 = vmax.f32 %v356_v26, %v364_v11 }
 0x359   : > { %v640_v13 = vmax.f32 %v630_v15, %v638_v50 }
 0x35a   : > { %v632_v59 = vpop.permute.xlu0 %631 }
 0x35b   : > { %v907_v42 = vpop.permute.xlu1 %906  ;;  %v637_v45 = vsel %vm2146_vm15, %v632_v59, -inf }
 0x35c   : > { %v911_v30 = vsel %vm2146_vm15, %v907_v42, -inf  ;;  %v639_v35 = vmax.f32 %v629_v28, %v637_v45 }
 0x35d   : > { %v913_v58 = vmax.f32 %v903_v20, %v911_v30 }
 0x35e   : > { %v905_v16 = vpop.permute.xlu0 %904 }
 0x35f   : > { %v1180_v54 = vpop.permute.xlu1 %1179  ;;  %v910_v43 = vsel %vm2146_vm15, %v905_v16, -inf }
 0x360   : > { %v1184_v31 = vsel %vm2146_vm15, %v1180_v54, -inf  ;;  %v912_v6 = vmax.f32 %v902_v57, %v910_v43 }
 0x361   : > { %v2576_v44 = vmax.f32 %v1176_v8, %v1184_v31 }
 0x362   : > { %v1178_v62 = vpop.permute.xlu0 %1177 }
 0x363   : > { %v371_v14 = vpop.permute.xlu1 %370  ;;  %v1183_v10 = vsel %vm2146_vm15, %v1178_v62, -inf }
 0x364   : > { %v375_v19 = vsel %vm203_vm10, %v371_v14, -inf  ;;  %v2578_v46 = vmax.f32 %v1175_v25, %v1183_v10 }
 0x365   : > { %v377_v36 = vmax.f32 %v367_v5, %v375_v19 }
 0x366   : > { %v369_v38 = vpop.permute.xlu0 %368 }
 0x367   : > { %v644_v41 = vpop.permute.xlu1 %643  ;;  %v374_v34 = vsel %vm203_vm10, %v369_v38, -inf }
 0x368   : > { %v648_v37 = vsel %vm203_vm10, %v644_v41, -inf  ;;  %v376_v47 = vmax.f32 %v366_v12, %v374_v34 }
 0x369   : > { %v650_v17 = vmax.f32 %v640_v13, %v648_v37 }
 0x36a   : > { %v642_v40 = vpop.permute.xlu0 %641 }
 0x36b   : > { %v917_v21 = vpop.permute.xlu1 %916  ;;  %v647_v39 = vsel %vm203_vm10, %v642_v40, -inf }
 0x36c   : > { %v921_v18 = vsel %vm203_vm10, %v917_v21, -inf  ;;  %v649_v54 = vmax.f32 %v639_v35, %v647_v39 }
 0x36d   : > { %v923_v22 = vmax.f32 %v913_v58, %v921_v18 }
 0x36e   : > { %v915_v51 = vpop.permute.xlu0 %914 }
 0x36f   : > { %v1190_v33 = vpop.permute.xlu1 %1189  ;;  %v920_v59 = vsel %vm203_vm10, %v915_v51, -inf }
 0x370   : > { %v1194_v62 = vsel %vm203_vm10, %v1190_v33, -inf  ;;  %v922_v23 = vmax.f32 %v912_v6, %v920_v59 }
 0x371   : > { %v1196_v51 = vmax.f32 %v2576_v44, %v1194_v62 }
 0x372   : > { %v1188_v27 = vpop.permute.xlu0 %1187 }
 0x373   : > { %v381_v52 = vpop.permute.xlu1 %380  ;;  %v2590_v14 = vsel %vm203_vm10, %v1188_v27, -inf }
 0x374   : > { %v385_v48 = vsel %vm207_vm11, %v381_v52, -inf  ;;  %v1195_v28 = vmax.f32 %v2578_v46, %v2590_v14 }
 0x375   : > { %v387_v42 = vmax.f32 %v377_v36, %v385_v48 }
 0x376   : > { %v379_v16 = vpop.permute.xlu0 %378 }
 0x377   : > { %v384_v38 = vsel %vm207_vm11, %v379_v16, -inf  ;;  %1422 = vst.msk [vmem:[%s1780_s18 + $0x88] sm:$0xff] %vm474_vm0, %v387_v42  ;;  %v654_v40 = vpop.permute.xlu1 %653  ;;  %v389_v49 = vrot.slane %v387_v42, 6  ;;  %v397_v2 = vrot.slane %v387_v42, 7  ;;  %v405_v9 = vrot.slane %v387_v42, 1 }
 0x378   : > { %v386_v41 = vmax.f32 %v376_v47, %v384_v38  ;;  %v658_v56 = vsel %vm207_vm11, %v654_v40, -inf  ;;  %v413_v21 = vrot.slane %v387_v42, 2 }
 0x379   : > { %v2600_v24 = vmax.f32 %v650_v17, %v658_v56 }
 0x37a   : > { %1421 = vst.msk [vmem:[%s1780_s18 + $0x80] sm:$0xff] %vm474_vm0, %v386_v41  ;;  %v652_v53 = vpop.permute.xlu0 %651  ;;  %v388_v26 = vrot.slane %v386_v41, 6  ;;  %v396_v15 = vrot.slane %v386_v41, 7  ;;  %v404_v60 = vrot.slane %v386_v41, 1  ;;  %v412_v57 = vrot.slane %v386_v41, 2 }
 0x37b   : > { %v657_v20 = vsel %vm207_vm11, %v652_v53, -inf  ;;  %1432 = vst.msk [vmem:[%s1780_s18 + $0x98] sm:$0xff] %vm474_vm0, %v2600_v24  ;;  %v927_v8 = vpop.permute.xlu1 %926  ;;  %v662_v47 = vrot.slane %v2600_v24, 6 }
 0x37c   : > { %v2610_v55 = vmax.f32 %v649_v54, %v657_v20  ;;  %v390_v11 = vsel %vm213_vm1, %v388_v26, %v389_v49  ;;  %v398_v50 = vsel %vm222_vm2, %v396_v15, %v397_v2  ;;  %v407_v45 = vsel %vm231_vm3, %v405_v9, %v404_v60 }
 0x37d   : > { %v931_v33 = vsel %vm207_vm11, %v927_v8, -inf  ;;  %v395_v25 = vmax.f32 %v387_v42, %v390_v11  ;;  %v409_v30 = vsel %vm182_vm4, %v407_v45, -inf  ;;  %v415_v43 = vsel %vm240_vm6, %v413_v21, %v412_v57 }
 0x37e   : > { %1431 = vst.msk [vmem:[%s1780_s18 + $0x90] sm:$0xff] %vm474_vm0, %v2610_v55  ;;  %v2627_v19 = vmax.f32 %v923_v22, %v931_v33  ;;  %v925_v5 = vpop.permute.xlu0 %924  ;;  %v417_v31 = vsel %vm190_vm5, %v415_v43, -inf  ;;  %v391_v10 = vsel %vm213_vm1, %v389_v49, %v388_v26  ;;  %v399_v34 = vsel %vm222_vm2, %v397_v2, %v396_v15 }
 0x37f   : > { %v930_v27 = vsel %vm207_vm11, %v925_v5, -inf  ;;  %v403_v12 = vmax.f32 %v395_v25, %v398_v50  ;;  %v392_v13 = vsel %vm163_vm7, %v391_v10, -inf  ;;  %v400_v35 = vsel %vm171_vm8, %v399_v34, -inf  ;;  %v1200_v58 = vpop.permute.xlu1 %1199 }
 0x380   : > { %1442 = vst.msk [vmem:[%s1780_s18 + $0xa8] sm:$0xff] %vm474_vm0, %v2627_v19  ;;  %v2644_v37 = vmax.f32 %v922_v23, %v930_v27  ;;  %v394_v6 = vmax.f32 %v386_v41, %v392_v13  ;;  %v406_v36 = vsel %vm231_vm3, %v404_v60, %v405_v9  ;;  %v414_v39 = vsel %vm240_vm6, %v412_v57, %v413_v21 }
 0x381   : > { %v1204_v52 = vsel %vm207_vm11, %v1200_v58, -inf  ;;  %v411_v44 = vmax.f32 %v403_v12, %v409_v30  ;;  %v661_v46 = vrot.slane %v2610_v55, 6  ;;  %v669_v59 = vrot.slane %v2610_v55, 7 }
 0x382   : > { %1441 = vst.msk [vmem:[%s1780_s18 + $0xa0] sm:$0xff] %vm474_vm0, %v2644_v37  ;;  %v2657_v48 = vmax.f32 %v1196_v51, %v1204_v52  ;;  %v1198_v17 = vpop.permute.xlu0 %1197  ;;  %v402_v18 = vmax.f32 %v394_v6, %v400_v35  ;;  %v670_v42 = vrot.slane %v2600_v24, 7  ;;  %v677_v14 = vrot.slane %v2610_v55, 1 }
 0x383   : > { %v1203_v16 = vsel %vm207_vm11, %v1198_v17, -inf  ;;  %v2663_v54 = vmax.f32 %v411_v44, %v417_v31  ;;  %v663_v62 = vsel %vm213_vm1, %v661_v46, %v662_v47  ;;  %v678_v2 = vrot.slane %v2600_v24, 1 }
 0x384   : > { %1452 = vst.msk [vmem:[%s1780_s18 + $0xb8] sm:$0xff] %vm474_vm0, %v2657_v48  ;;  %v2671_v38 = vmax.f32 %v1195_v28, %v1203_v16  ;;  %v410_v41 = vmax.f32 %v402_v18, %v406_v36  ;;  %v668_v40 = vmax.f32 %v2600_v24, %v663_v62  ;;  %v671_v49 = vsel %vm222_vm2, %v669_v59, %v670_v42 }
 0x385   : > { %423 = vrot.lane.b32.xlu1 %v2663_v54, %s1646_s25  ;;  %v685_v9 = vrot.slane %v2610_v55, 2  ;;  %v686_v22 = vrot.slane %v2600_v24, 2  ;;  %v664_v23 = vsel %vm213_vm1, %v662_v47, %v661_v46  ;;  %v672_v26 = vsel %vm222_vm2, %v670_v42, %v669_v59 }
 0x386   : > { %1451 = vst.msk [vmem:[%s1780_s18 + $0xb0] sm:$0xff] %vm474_vm0, %v2671_v38  ;;  %v2686_v56 = vmax.f32 %v410_v41, %v414_v39  ;;  %v676_v21 = vmax.f32 %v668_v40, %v671_v49  ;;  %v665_v53 = vsel %vm163_vm7, %v664_v23, -inf  ;;  %v680_v15 = vsel %vm231_vm3, %v678_v2, %v677_v14 }
 0x387   : > { %v688_v24 = vsel %vm240_vm6, %v686_v22, %v685_v9  ;;  %v667_v60 = vmax.f32 %v2610_v55, %v665_v53  ;;  %v682_v51 = vsel %vm182_vm4, %v680_v15, -inf  ;;  %v673_v20 = vsel %vm171_vm8, %v672_v26, -inf }
 0x388   : > { %420 = vrot.lane.b32.xlu0 %v2686_v56, %s1646_s25  ;;  %v690_v28 = vsel %vm190_vm5, %v688_v24, -inf  ;;  %v679_v57 = vsel %vm231_vm3, %v677_v14, %v678_v2  ;;  %v684_v8 = vmax.f32 %v676_v21, %v682_v51  ;;  %v934_v50 = vrot.slane %v2644_v37, 6 }
 0x389   : > { %v675_v11 = vmax.f32 %v667_v60, %v673_v20  ;;  %v935_v55 = vrot.slane %v2627_v19, 6  ;;  %v942_v45 = vrot.slane %v2644_v37, 7  ;;  %v943_v33 = vrot.slane %v2627_v19, 7 }
 0x38a   : > { %v950_v25 = vrot.slane %v2644_v37, 1  ;;  %v951_v30 = vrot.slane %v2627_v19, 1  ;;  %v2713_v43 = vmax.f32 %v684_v8, %v690_v28  ;;  %v958_v10 = vrot.slane %v2644_v37, 2 }
 0x38b   : > { %v683_v5 = vmax.f32 %v675_v11, %v679_v57  ;;  %v936_v31 = vsel %vm213_vm1, %v934_v50, %v935_v55  ;;  %v687_v34 = vsel %vm240_vm6, %v685_v9, %v686_v22  ;;  %v959_v13 = vrot.slane %v2627_v19, 2 }
 0x38c   : > { %v941_v27 = vmax.f32 %v2627_v19, %v936_v31  ;;  %v953_v12 = vsel %vm231_vm3, %v951_v30, %v950_v25  ;;  %696 = vrot.lane.b32.xlu1 %v2713_v43, %s1646_s25  ;;  %v944_v58 = vsel %vm222_vm2, %v942_v45, %v943_v33  ;;  %v937_v6 = vsel %vm213_vm1, %v935_v55, %v934_v50 }
 0x38d   : > { %v2726_v35 = vmax.f32 %v683_v5, %v687_v34  ;;  %v945_v36 = vsel %vm222_vm2, %v943_v33, %v942_v45  ;;  %v955_v52 = vsel %vm182_vm4, %v953_v12, -inf  ;;  %v961_v19 = vsel %vm240_vm6, %v959_v13, %v958_v10 }
 0x38e   : > { %v949_v39 = vmax.f32 %v941_v27, %v944_v58  ;;  %v938_v44 = vsel %vm163_vm7, %v937_v6, -inf  ;;  %v963_v46 = vsel %vm190_vm5, %v961_v19, -inf  ;;  %v946_v17 = vsel %vm171_vm8, %v945_v36, -inf }
 0x38f   : > { %693 = vrot.lane.b32.xlu0 %v2726_v35, %s1646_s25  ;;  %v940_v47 = vmax.f32 %v2644_v37, %v938_v44  ;;  %v952_v18 = vsel %vm231_vm3, %v950_v25, %v951_v30  ;;  %v1207_v42 = vrot.slane %v2671_v38, 6  ;;  %v1208_v16 = vrot.slane %v2657_v48, 6 }
 0x390   : > { %v957_v59 = vmax.f32 %v949_v39, %v955_v52  ;;  %v1215_v62 = vrot.slane %v2671_v38, 7  ;;  %v1216_v41 = vrot.slane %v2657_v48, 7  ;;  %v1223_v40 = vrot.slane %v2671_v38, 1 }
 0x391   : > { %v948_v14 = vmax.f32 %v940_v47, %v946_v17  ;;  %v1224_v37 = vrot.slane %v2657_v48, 1  ;;  %v1209_v2 = vsel %vm213_vm1, %v1207_v42, %v1208_v16  ;;  %v1231_v9 = vrot.slane %v2671_v38, 2 }
 0x392   : > { %v2755_v49 = vmax.f32 %v957_v59, %v963_v46  ;;  %v1232_v22 = vrot.slane %v2657_v48, 2  ;;  %v1214_v21 = vmax.f32 %v2657_v48, %v1209_v2  ;;  %v960_v26 = vsel %vm240_vm6, %v958_v10, %v959_v13 }
 0x393   : > { %v956_v23 = vmax.f32 %v948_v14, %v952_v18  ;;  %v1226_v53 = vsel %vm231_vm3, %v1224_v37, %v1223_v40  ;;  %v1217_v15 = vsel %vm222_vm2, %v1215_v62, %v1216_v41  ;;  %v1210_v24 = vsel %vm213_vm1, %v1208_v16, %v1207_v42 }
 0x394   : > { %969 = vrot.lane.b32.xlu1 %v2755_v49, %s1646_s25  ;;  %v1218_v60 = vsel %vm222_vm2, %v1216_v41, %v1215_v62  ;;  %v1222_v48 = vmax.f32 %v1214_v21, %v1217_v15  ;;  %v1234_v28 = vsel %vm240_vm6, %v1232_v22, %v1231_v9  ;;  %v1211_v20 = vsel %vm163_vm7, %v1210_v24, -inf }
 0x395   : > { %v2774_v51 = vmax.f32 %v956_v23, %v960_v26  ;;  %v1228_v57 = vsel %vm182_vm4, %v1226_v53, -inf  ;;  %v1213_v8 = vmax.f32 %v2671_v38, %v1211_v20  ;;  %v1219_v50 = vsel %vm171_vm8, %v1218_v60, -inf }
 0x396   : > { %v1230_v11 = vmax.f32 %v1222_v48, %v1228_v57  ;;  %v1236_v55 = vsel %vm190_vm5, %v1234_v28, -inf  ;;  %v1225_v61 = vsel %vm231_vm3, %v1223_v40, %v1224_v37  ;;  %v1233_v38 = vsel %vm240_vm6, %v1231_v9, %v1232_v22 }
 0x397   : > { %966 = vrot.lane.b32.xlu0 %v2774_v51, %s1646_s25  ;;  %v1221_v45 = vmax.f32 %v1213_v8, %v1219_v50 }
 0x398   : > { %v2789_v33 = vmax.f32 %v1230_v11, %v1236_v55 }
 0x399   : > { %v1229_v3 = vmax.f32 %v1221_v45, %v1225_v61 }
 0x39a   : > { %1242 = vrot.lane.b32.xlu1 %v2789_v33, %s1646_s25 }
 0x39b   : > { %v2797_v25 = vmax.f32 %v1229_v3, %v1233_v38 }
 0x39d   : > { %1239 = vrot.lane.b32.xlu0 %v2797_v25, %s1646_s25 }
 0x3f7   : > { %v424_v4 = vpop.permute.xlu1 %423 }
 0x3f8   : > { %v425_v63 = vsel %vm247_vm9, %v424_v4, %v2663_v54 }
 0x3f9   : > { %428 = vrot.lane.b32.xlu1 %v425_v63, %s1646_s25 }
 0x3fa   : > { %v421_v30 = vpop.permute.xlu0 %420 }
 0x3fb   : > { %v422_v5 = vsel %vm247_vm9, %v421_v30, %v2686_v56 }
 0x3fc   : > { %426 = vrot.lane.b32.xlu0 %v422_v5, %s1646_s25 }
 0x3fe   : > { %v697_v31 = vpop.permute.xlu1 %696 }
 0x3ff   : > { %v698_v1 = vsel %vm247_vm9, %v697_v31, %v2713_v43 }
 0x400   : > { %701 = vrot.lane.b32.xlu1 %v698_v1, %s1646_s25 }
 0x401   : > { %v694_v10 = vpop.permute.xlu0 %693 }
 0x402   : > { %v695_v34 = vsel %vm247_vm9, %v694_v10, %v2726_v35 }
 0x403   : > { %699 = vrot.lane.b32.xlu0 %v695_v34, %s1646_s25 }
 0x406   : > { %v970_v27 = vpop.permute.xlu1 %969 }
 0x407   : > { %v971_v12 = vsel %vm247_vm9, %v970_v27, %v2755_v49 }
 0x408   : > { %974 = vrot.lane.b32.xlu1 %v971_v12, %s1646_s25 }
 0x409   : > { %v967_v13 = vpop.permute.xlu0 %966 }
 0x40a   : > { %v968_v58 = vsel %vm247_vm9, %v967_v13, %v2774_v51 }
 0x40b   : > { %972 = vrot.lane.b32.xlu0 %v968_v58, %s1646_s25 }
 0x40c   : > { %v1243_v6 = vpop.permute.xlu1 %1242 }
 0x40d   : > { %v1244_v36 = vsel %vm247_vm9, %v1243_v6, %v2789_v33 }
 0x40e   : > { %1247 = vrot.lane.b32.xlu1 %v1244_v36, %s1646_s25 }
 0x40f   : > { %v1240_v39 = vpop.permute.xlu0 %1239 }
 0x410   : > { %v1241_v52 = vsel %vm247_vm9, %v1240_v39, %v2797_v25 }
 0x411   : > { %1245 = vrot.lane.b32.xlu0 %v1241_v52, %s1646_s25 }
 0x46b   : > { %v429_v19 = vpop.permute.xlu1 %428 }
 0x46c   : > { %v431_v44 = vsel %vm247_vm9, %v429_v19, %v2663_v54 }
 0x46d   : > { %436 = vrot.lane.b32.xlu1 %v431_v44, %s1647_s26 }
 0x46e   : > { %v427_v46 = vpop.permute.xlu0 %426 }
 0x46f   : > { %v430_v47 = vsel %vm247_vm9, %v427_v46, %v2686_v56 }
 0x470   : > { %434 = vrot.lane.b32.xlu0 %v430_v47, %s1647_s26 }
 0x472   : > { %v702_v17 = vpop.permute.xlu1 %701 }
 0x473   : > { %v704_v18 = vsel %vm247_vm9, %v702_v17, %v2713_v43 }
 0x474   : > { %709 = vrot.lane.b32.xlu1 %v704_v18, %s1647_s26 }
 0x475   : > { %v700_v59 = vpop.permute.xlu0 %699 }
 0x476   : > { %v703_v42 = vsel %vm247_vm9, %v700_v59, %v2726_v35 }
 0x477   : > { %707 = vrot.lane.b32.xlu0 %v703_v42, %s1647_s26 }
 0x47a   : > { %v975_v16 = vpop.permute.xlu1 %974 }
 0x47b   : > { %v977_v62 = vsel %vm247_vm9, %v975_v16, %v2755_v49 }
 0x47c   : > { %982 = vrot.lane.b32.xlu1 %v977_v62, %s1647_s26 }
 0x47d   : > { %v973_v14 = vpop.permute.xlu0 %972 }
 0x47e   : > { %v976_v41 = vsel %vm247_vm9, %v973_v14, %v2774_v51 }
 0x47f   : > { %980 = vrot.lane.b32.xlu0 %v976_v41, %s1647_s26 }
 0x480   : > { %v1248_v40 = vpop.permute.xlu1 %1247 }
 0x481   : > { %v1250_v37 = vsel %vm247_vm9, %v1248_v40, %v2789_v33 }
 0x482   : > { %1255 = vrot.lane.b32.xlu1 %v1250_v37, %s1647_s26 }
 0x483   : > { %v1246_v2 = vpop.permute.xlu0 %1245 }
 0x484   : > { %v1249_v9 = vsel %vm247_vm9, %v1246_v2, %v2797_v25 }
 0x485   : > { %1253 = vrot.lane.b32.xlu0 %v1249_v9, %s1647_s26 }
 0x486   : > { %446 = vrot.lane.b32.xlu1 %v431_v44, %s1648_s27 }
 0x489   : > { %444 = vrot.lane.b32.xlu0 %v430_v47, %s1648_s27 }
 0x48a   : > { %719 = vrot.lane.b32.xlu1 %v704_v18, %s1648_s27 }
 0x48d   : > { %717 = vrot.lane.b32.xlu0 %v703_v42, %s1648_s27 }
 0x48e   : > { %992 = vrot.lane.b32.xlu1 %v977_v62, %s1648_s27 }
 0x491   : > { %990 = vrot.lane.b32.xlu0 %v976_v41, %s1648_s27 }
 0x492   : > { %1265 = vrot.lane.b32.xlu1 %v1250_v37, %s1648_s27 }
 0x495   : > { %1263 = vrot.lane.b32.xlu0 %v1249_v9, %s1648_s27 }
 0x496   : > { %456 = vrot.lane.b32.xlu1 %v431_v44, %s1649_s28 }
 0x499   : > { %454 = vrot.lane.b32.xlu0 %v430_v47, %s1649_s28 }
 0x49a   : > { %729 = vrot.lane.b32.xlu1 %v704_v18, %s1649_s28 }
 0x49d   : > { %727 = vrot.lane.b32.xlu0 %v703_v42, %s1649_s28 }
 0x49e   : > { %1002 = vrot.lane.b32.xlu1 %v977_v62, %s1649_s28 }
 0x4a1   : > { %1000 = vrot.lane.b32.xlu0 %v976_v41, %s1649_s28 }
 0x4a2   : > { %1275 = vrot.lane.b32.xlu1 %v1250_v37, %s1649_s28 }
 0x4a5   : > { %1273 = vrot.lane.b32.xlu0 %v1249_v9, %s1649_s28 }
 0x4a6   : > { %466 = vrot.lane.b32.xlu1 %v431_v44, %s1650_s29 }
 0x4a9   : > { %464 = vrot.lane.b32.xlu0 %v430_v47, %s1650_s29 }
 0x4aa   : > { %739 = vrot.lane.b32.xlu1 %v704_v18, %s1650_s29 }
 0x4ad   : > { %737 = vrot.lane.b32.xlu0 %v703_v42, %s1650_s29 }
 0x4ae   : > { %1012 = vrot.lane.b32.xlu1 %v977_v62, %s1650_s29 }
 0x4b1   : > { %1010 = vrot.lane.b32.xlu0 %v976_v41, %s1650_s29 }
 0x4b2   : > { %1285 = vrot.lane.b32.xlu1 %v1250_v37, %s1650_s29 }
 0x4b5   : > { %1283 = vrot.lane.b32.xlu0 %v1249_v9, %s1650_s29 }
 0x4df   : > { %v437_v22 = vpop.permute.xlu1 %436 }
 0x4e0   : > { %v441_v63 = vsel %vm2140_vm12, %v437_v22, -inf }
 0x4e1   : > { %v443_v31 = vmax.f32 %v2663_v54, %v441_v63 }
 0x4e2   : > { %v435_v23 = vpop.permute.xlu0 %434 }
 0x4e3   : > { %v440_v1 = vsel %vm2140_vm12, %v435_v23, -inf }
 0x4e4   : > { %v442_v58 = vmax.f32 %v2686_v56, %v440_v1 }
 0x4e6   : > { %v710_v21 = vpop.permute.xlu1 %709 }
 0x4e7   : > { %v714_v34 = vsel %vm2140_vm12, %v710_v21, -inf }
 0x4e8   : > { %v716_v39 = vmax.f32 %v2713_v43, %v714_v34 }
 0x4e9   : > { %v708_v53 = vpop.permute.xlu0 %707 }
 0x4ea   : > { %v713_v6 = vsel %vm2140_vm12, %v708_v53, -inf }
 0x4eb   : > { %v715_v18 = vmax.f32 %v2726_v35, %v713_v6 }
 0x4ee   : > { %v983_v26 = vpop.permute.xlu1 %982 }
 0x4ef   : > { %v987_v52 = vsel %vm2140_vm12, %v983_v26, -inf }
 0x4f0   : > { %v989_v16 = vmax.f32 %v2755_v49, %v987_v52 }
 0x4f1   : > { %v981_v15 = vpop.permute.xlu0 %980 }
 0x4f2   : > { %v986_v62 = vsel %vm2140_vm12, %v981_v15, -inf }
 0x4f4   : > { %v1256_v24 = vpop.permute.xlu1 %1255 }
 0x4f5   : > { %v1260_v37 = vsel %vm2140_vm12, %v1256_v24, -inf }
 0x4f7   : > { %v2873_v60 = vpop.permute.xlu0 %1253 }
 0x4f8   : > { %v447_v48 = vpop.permute.xlu1 %446 }
 0x4f9   : > { %v451_v30 = vsel %vm2146_vm15, %v447_v48, -inf  ;;  %v988_v48 = vmax.f32 %v2774_v51, %v986_v62 }
 0x4fa   : > { %v453_v12 = vmax.f32 %v443_v31, %v451_v30 }
 0x4fb   : > { %v445_v28 = vpop.permute.xlu0 %444 }
 0x4fc   : > { %v720_v20 = vpop.permute.xlu1 %719  ;;  %v450_v13 = vsel %vm2146_vm15, %v445_v28, -inf  ;;  %v1262_v28 = vmax.f32 %v2789_v33, %v1260_v37 }
 0x4fd   : > { %v724_v54 = vsel %vm2146_vm15, %v720_v20, -inf  ;;  %v452_v47 = vmax.f32 %v442_v58, %v450_v13 }
 0x4fe   : > { %v726_v59 = vmax.f32 %v716_v39, %v724_v54 }
 0x4ff   : > { %v718_v57 = vpop.permute.xlu0 %717 }
 0x500   : > { %v993_v8 = vpop.permute.xlu1 %992  ;;  %v723_v43 = vsel %vm2146_vm15, %v718_v57, -inf }
 0x501   : > { %v997_v14 = vsel %vm2146_vm15, %v993_v8, -inf  ;;  %v725_v22 = vmax.f32 %v715_v18, %v723_v43 }
 0x502   : > { %v999_v26 = vmax.f32 %v989_v16, %v997_v14 }
 0x503   : > { %v2875_v11 = vpop.permute.xlu0 %990 }
 0x504   : > { %v2877_v50 = vpop.permute.xlu1 %1265  ;;  %v996_v15 = vsel %vm2146_vm15, %v2875_v11, -inf }
 0x505   : > { %v1270_v20 = vsel %vm2146_vm15, %v2877_v50, -inf  ;;  %v998_v50 = vmax.f32 %v988_v48, %v996_v15 }
 0x507   : > { %v2879_v55 = vpop.permute.xlu0 %1263 }
 0x508   : > { %v457_v45 = vpop.permute.xlu1 %456 }
 0x509   : > { %v461_v27 = vsel %vm203_vm10, %v457_v45, -inf  ;;  %v1259_v45 = vsel %vm2140_vm12, %v2873_v60, -inf  ;;  %v1272_v60 = vmax.f32 %v1262_v28, %v1270_v20 }
 0x50a   : > { %v463_v19 = vmax.f32 %v453_v12, %v461_v27  ;;  %v1261_v30 = vmax.f32 %v2797_v25, %v1259_v45 }
 0x50b   : > { %v455_v61 = vpop.permute.xlu0 %454 }
 0x50c   : > { %v730_v3 = vpop.permute.xlu1 %729  ;;  %v460_v44 = vsel %vm203_vm10, %v455_v61, -inf }
 0x50d   : > { %v734_v56 = vsel %vm203_vm10, %v730_v3, -inf  ;;  %v462_v41 = vmax.f32 %v452_v47, %v460_v44 }
 0x50e   : > { %v736_v2 = vmax.f32 %v726_v59, %v734_v56 }
 0x50f   : > { %v728_v38 = vpop.permute.xlu0 %727 }
 0x510   : > { %v1003_v4 = vpop.permute.xlu1 %1002  ;;  %v733_v35 = vsel %vm203_vm10, %v728_v38, -inf }
 0x511   : > { %v1007_v23 = vsel %vm203_vm10, %v1003_v4, -inf  ;;  %v735_v57 = vmax.f32 %v725_v22, %v733_v35  ;;  %v1269_v4 = vsel %vm2146_vm15, %v2879_v55, -inf }
 0x512   : > { %v1009_v61 = vmax.f32 %v999_v26, %v1007_v23  ;;  %v1271_v34 = vmax.f32 %v1261_v30, %v1269_v4 }
 0x513   : > { %v1001_v5 = vpop.permute.xlu0 %1000 }
 0x514   : > { %v1276_v10 = vpop.permute.xlu1 %1275  ;;  %v1006_v11 = vsel %vm203_vm10, %v1001_v5, -inf }
 0x515   : > { %v1280_v3 = vsel %vm203_vm10, %v1276_v10, -inf  ;;  %v1008_v5 = vmax.f32 %v998_v50, %v1006_v11 }
 0x516   : > { %v1282_v1 = vmax.f32 %v1272_v60, %v1280_v3 }
 0x517   : > { %v1274_v36 = vpop.permute.xlu0 %1273 }
 0x518   : > { %v467_v46 = vpop.permute.xlu1 %466  ;;  %v1279_v10 = vsel %vm203_vm10, %v1274_v36, -inf }
 0x519   : > { %v471_v17 = vsel %vm207_vm11, %v467_v46, -inf  ;;  %v1281_v13 = vmax.f32 %v1271_v34, %v1279_v10 }
 0x51a   : > { %v473_v42 = vmax.f32 %v463_v19, %v471_v17 }
 0x51b   : > { %v465_v40 = vpop.permute.xlu0 %464 }
 0x51c   : > { %1424 = vst.msk [vmem:[%s1780_s18 + $0xc8] sm:$0xff] %vm474_vm0, %v473_v42  ;;  %v470_v49 = vsel %vm207_vm11, %v465_v40, -inf  ;;  %v740_v9 = vpop.permute.xlu1 %739 }
 0x51d   : > { %v472_v21 = vmax.f32 %v462_v41, %v470_v49  ;;  %v744_v53 = vsel %vm207_vm11, %v740_v9, -inf }
 0x51e   : > { %v746_v24 = vmax.f32 %v736_v2, %v744_v53 }
 0x51f   : > { %1423 = vst.msk [vmem:[%s1780_s18 + $0xc0] sm:$0xff] %vm474_vm0, %v472_v21  ;;  %v738_v8 = vpop.permute.xlu0 %737 }
 0x520   : > { %1434 = vst.msk [vmem:[%s1780_s18 + $0xd8] sm:$0xff] %vm474_vm0, %v746_v24  ;;  %v743_v51 = vsel %vm207_vm11, %v738_v8, -inf  ;;  %v1013_v33 = vpop.permute.xlu1 %1012 }
 0x521   : > { %v745_v38 = vmax.f32 %v735_v57, %v743_v51  ;;  %v1017_v29 = vsel %vm207_vm11, %v1013_v33, -inf }
 0x522   : > { %v1019_v63 = vmax.f32 %v1009_v61, %v1017_v29 }
 0x523   : > { %1433 = vst.msk [vmem:[%s1780_s18 + $0xd0] sm:$0xff] %vm474_vm0, %v745_v38  ;;  %v1011_v31 = vpop.permute.xlu0 %1010 }
 0x524   : > { %1444 = vst.msk [vmem:[%s1780_s18 + $0xe8] sm:$0xff] %vm474_vm0, %v1019_v63  ;;  %v1016_v32 = vsel %vm207_vm11, %v1011_v31, -inf  ;;  %v1286_v55 = vpop.permute.xlu1 %1285 }
 0x525   : > { %v1018_v25 = vmax.f32 %v1008_v5, %v1016_v32  ;;  %v1290_v27 = vsel %vm207_vm11, %v1286_v55, -inf }
 0x526   : > { %v1292_v12 = vmax.f32 %v1282_v1, %v1290_v27 }
 0x527   : > { %1443 = vst.msk [vmem:[%s1780_s18 + $0xe0] sm:$0xff] %vm474_vm0, %v1018_v25  ;;  %v1284_v0 = vpop.permute.xlu0 %1283 }
 0x528   : > { %1454 = vst.msk [vmem:[%s1780_s18 + $0xf8] sm:$0xff] %vm474_vm0, %v1292_v12  ;;  %v1289_v58 = vsel %vm207_vm11, %v1284_v0, -inf }
 0x529   : > { %v1291_v6 = vmax.f32 %v1281_v13, %v1289_v58 }
 0x52b   : > { %1453 = vst.msk [vmem:[%s1780_s18 + $0xf0] sm:$0xff] %vm474_vm0, %v1291_v6 }
 0x52c   : > { %1574 = shalt.err (!%p1571_p6)
}
 0x52d   : > { %s1575_s22 = scalar_lea.hbm %s2976_s5, 4096  ;;  %s1579_s18 = scalar_lea.hbm %s3029_s1, 8192 }
 0x52e   : > { %p1576_p7 = scmp.ne.s32.totalorder %s2976_s5, %s1575_s22  ;;  %p1580_p13 = scmp.lt.s32.totalorder %s2976_s5, %s3029_s1 }
 0x52f   : > { %p1581_p2 = scmp.lt.s32.totalorder %s1579_s18, %s1575_s22 }
 0x530   : > { %p1577_p10 = pnand %p1576_p7, %p1715_p9 }
 0x531   : > { %p1582_p8 = por %p1581_p2, %p1580_p13 }
 0x532   : > { %p1578_p4 = pneg %p1577_p10 }
 0x534   : > { %p1583_p12 = pnand %p1582_p8, %p1578_p4 }
 0x536   : > { %1586 = shalt.err (!%p1583_p12)
}
 0x537   : > { %s1652_s27 = smov 128   ;;  %s1653_s28 = smov 8  }
 0x538   : > { %1464 = dma.vmem_to_hbm [thread:$0]  (%p1715_p9), %s2978_s2, 4096, %s2976_s5, %s1306_s9, %s1652_s27, %s1652_s27, %s1653_s28  }
 0x539 PF: > { %s1337_s29 = sand.u32 1, %s1621_s6   ;;  %p3039_p0 = scmp.ge.s32.totalorder %s1641_s11, 2 }
 0x53a   : > { %s1338_s30 = scalar_lea.sflag [#allocation4], %s1337_s29 }
 0x53b   : > { %p1471_p1 = pnand %p3039_p0, %p1722_p11 }
 0x53d   : > { %p1472_p3 = pneg %p1471_p1 }
 0x53f   : > { %1616 = dma.done.wait (%p1472_p3), %s1338_s30, 4096  }
 0x540   : > { %1618 = vsyncadd (%p1472_p3), %s1338_s30, 4294963200  ;;  %s17_s11 = sadd.s32 1, %s1641_s11   ;;  %s3040_s6 = smov %s1625_s7 }
 0x541   : > { %p14_p5 = scmp.ge.s32.totalorder %s17_s11, 4   ;;  %s3041_s7 = smov %s1629_s8 }
 0x542   : > { %s3042_s8 = smov %s1720_s20  ;;  %s3043_s9 = smov %s1637_s10 }
 0x543   : > { %s3044_s10 = smov %s3046_s14  ;;  %16 = sbr.rel (!%p14_p5) target bundleno = 6 (0x6), region = 87 }
 0x548   :  { %1343 = vsyncpa [#allocation3], 1 }
 0x549   :  { %1345 = vsyncpa [#allocation3 + $0x1], 1 }
 0x54a   :  { %1346 = vsyncpa [#allocation4], 1 }
 0x54b   :  { %1348 = vsyncpa [#allocation4 + $0x1], 1 }

</bundles_post_ra>
